<compile_context>
chip_gen: v7x
topology: tpu7x:2x2x1
jax: 0.10.0
libtpu: 0.0.40
codegen_flags: <defaults>
</compile_context>

<pallas_src>
import functools

import jax
import jax.numpy as jnp
from jax.experimental import pallas as pl
from jax.experimental.pallas import tpu as pltpu

MATMUL_DTYPE = jnp.bfloat16   # MXU operand dtype (accumulation is always f32)


# ------------------------------ fused kernel -------------------------------

def _lenet5_kernel(x_ref, w1_ref, b1_ref, w2_ref, b2_ref, w3_ref, b3_ref,
                   fw1_ref, fb1_ref, fw2_ref, fb2_ref,
                   sh1_ref, pw1_ref, sh2_ref, pw2_ref,
                   o_ref, *, batch, mm_dtype):
    f32 = jnp.float32
    sh1 = sh1_ref[...]    # (14, 28)   height 2x2-pool factor (entries 0 / 0.5)
    pw1 = pw1_ref[...]    # (168, 84)  block-diagonal width pool factor
    sh2 = sh2_ref[...]    # (5, 10)
    pw2 = pw2_ref[...]    # (160, 80)

    # TODO(synk): for large batch, switch to grid=(B,) with
    # dimension_semantics=("parallel",) so v7x's two TensorCores split the work
    # and per-block VMEM stays bounded; at B=2 one unrolled invocation is cheaper.
    for b in range(batch):
        xb = x_ref[b, 0]                                   # (32, 32) f32

        # ---- C1: conv 5x5, 1 -> 6, output layout (28, 6*28) ----
        z1 = jnp.zeros((28, 6 * 28), f32)
        for kh in range(5):
            lhs = xb[kh:kh + 28, :].astype(mm_dtype)       # (28, 32)
            z1 = z1 + jnp.dot(lhs, w1_ref[kh], preferred_element_type=f32)

        # ---- S2: 2x2 avg-pool (as two matmuls) + bias + tanh -> (14, 6*14) ----
        a1 = jnp.dot(jnp.dot(sh1, z1, preferred_element_type=f32), pw1,
                     preferred_element_type=f32)
        a1 = jnp.tanh(a1 + b1_ref[...])

        # ---- C3: conv 5x5, 6 -> 16, output layout (10, 16*10) ----
        z2 = jnp.zeros((10, 16 * 10), f32)
        for kh in range(5):
            lhs = a1[kh:kh + 10, :].astype(mm_dtype)       # (10, 84)
            z2 = z2 + jnp.dot(lhs, w2_ref[kh], preferred_element_type=f32)

        # ---- S4: 2x2 avg-pool + bias + tanh -> (5, 16*5) ----
        a2 = jnp.dot(jnp.dot(sh2, z2, preferred_element_type=f32), pw2,
                     preferred_element_type=f32)
        a2 = jnp.tanh(a2 + b2_ref[...])

        # ---- C5: conv 5x5, 16 -> 120 on a 5x5 input == full contraction ----
        z3 = jnp.zeros((1, 120), f32)
        for kh in range(5):
            lhs = a2[kh:kh + 1, :].astype(mm_dtype)        # (1, 80)
            z3 = z3 + jnp.dot(lhs, w3_ref[kh], preferred_element_type=f32)
        h = z3 + b3_ref[...]                               # (1, 120), no tanh (matches spec)

        # ---- F6: Linear 120 -> 84 + tanh; F7: Linear 84 -> 10 ----
        h = jnp.tanh(jnp.dot(h.astype(mm_dtype), fw1_ref[...],
                             preferred_element_type=f32) + fb1_ref[...])
        logits = jnp.dot(h.astype(mm_dtype), fw2_ref[...],
                         preferred_element_type=f32) + fb2_ref[...]
        o_ref[b:b + 1, :] = logits.astype(o_ref.dtype)


# --------------------- one-time weight / constant re-layout ----------------

def _shift_select(width, out, k):
    """S[w, ow, kw] = 1.0 where w == ow + kw (valid-conv band selector)."""
    w = jnp.arange(width)[:, None, None]
    ow = jnp.arange(out)[None, :, None]
    kw = jnp.arange(k)[None, None, :]
    return (w == ow + kw).astype(jnp.float32)


def _pool_half(n):
    """P[i, j] = 0.5 where j in {2i, 2i+1}: one factor of a 2x2 average pool."""
    i = jnp.arange(n // 2)[:, None]
    j = jnp.arange(n)[None, :]
    return 0.5 * ((j == 2 * i) | (j == 2 * i + 1)).astype(jnp.float32)


def prepare_params(params, matmul_dtype=MATMUL_DTYPE):
    """Re-layout PyTorch-style LeNet-5 params into kernel layout (done once)."""
    md = matmul_dtype
    w1 = params["conv1_w"]            # (6, 1, 5, 5)
    w2 = params["conv2_w"]            # (16, 6, 5, 5)
    w3 = params["conv3_w"]            # (120, 16, 5, 5)

    # conv1 -> (KH, 32, OC*28):  W1[kh, w, oc*28+ow] = w1[oc, 0, kh, w-ow]
    s1 = _shift_select(32, 28, 5)
    w1b = jnp.einsum("wok,chk->hwco", s1, w1[:, 0]).reshape(5, 32, 6 * 28)
    # conv2 -> (KH, IC*14, OC*10): W2[kh, ic*14+w, oc*10+ow] = w2[oc, ic, kh, w-ow]
    s2 = _shift_select(14, 10, 5)
    w2b = jnp.einsum("wok,cihk->hiwco", s2, w2).reshape(5, 6 * 14, 16 * 10)
    # conv3 (1x1 output) -> (KH, IC*5, OC): W3[kh, ic*5+kw, oc] = w3[oc, ic, kh, kw]
    w3b = jnp.transpose(w3, (2, 1, 3, 0)).reshape(5, 16 * 5, 120)

    return {
        "w1": w1b.astype(md),
        "b1": jnp.repeat(params["conv1_b"], 14)[None, :].astype(jnp.float32),  # (1, 84)
        "w2": w2b.astype(md),
        "b2": jnp.repeat(params["conv2_b"], 5)[None, :].astype(jnp.float32),   # (1, 80)
        "w3": w3b.astype(md),
        "b3": params["conv3_b"][None, :].astype(jnp.float32),                  # (1, 120)
        "fw1": params["fc1_w"].T.astype(md),                                   # (120, 84)
        "fb1": params["fc1_b"][None, :].astype(jnp.float32),                   # (1, 84)
        "fw2": params["fc2_w"].T.astype(md),                                   # (84, 10)
        "fb2": params["fc2_b"][None, :].astype(jnp.float32),                   # (1, 10)
        "sh1": _pool_half(28),                                                 # (14, 28)
        "pw1": jnp.kron(jnp.eye(6, dtype=jnp.float32), _pool_half(28).T),      # (168, 84)
        "sh2": _pool_half(10),                                                 # (5, 10)
        "pw2": jnp.kron(jnp.eye(16, dtype=jnp.float32), _pool_half(10).T),     # (160, 80)
    }


# --------------------------------- forward ---------------------------------

def lenet5_forward(prep, x_nchw):
    """x_nchw: (B, 1, 32, 32) float32 (PyTorch NCHW) -> logits (B, 10) float32."""
    B = x_nchw.shape[0]
    assert x_nchw.shape[1:] == (1, 32, 32)
    x = x_nchw.astype(jnp.float32)
    mm_dtype = prep["w1"].dtype

    args = (x, prep["w1"], prep["b1"], prep["w2"], prep["b2"],
            prep["w3"], prep["b3"], prep["fw1"], prep["fb1"],
            prep["fw2"], prep["fb2"],
            prep["sh1"], prep["pw1"], prep["sh2"], prep["pw2"])

    kernel = functools.partial(_lenet5_kernel, batch=B, mm_dtype=mm_dtype)
    flops = 2 * B * (28 * 28 * 25 * 6 + 14 * 28 * 168 + 14 * 168 * 84
                     + 10 * 10 * 25 * 6 * 16 + 5 * 10 * 160 + 5 * 160 * 80
                     + 400 * 120 + 120 * 84 + 84 * 10)
    bytes_accessed = sum(int(a.size) * a.dtype.itemsize for a in args) + B * 10 * 4

    return pl.pallas_call(
        kernel,
        out_shape=jax.ShapeDtypeStruct((B, 10), jnp.float32),
        in_specs=[pl.BlockSpec(memory_space=pltpu.MemorySpace.VMEM)] * len(args),
        out_specs=pl.BlockSpec(memory_space=pltpu.MemorySpace.VMEM),
        cost_estimate=pl.CostEstimate(
            flops=flops,
            transcendentals=B * (14 * 84 + 5 * 80 + 84),
            bytes_accessed=bytes_accessed),
    )(*args)


# ------------------------------- model setup --------------------------------

def init_params(key):
    keys = jax.random.split(key, 10)

    def u(k, shape, fan_in):
        bound = 1.0 / jnp.sqrt(jnp.float32(fan_in))
        return jax.random.uniform(k, shape, jnp.float32, -bound, bound)

    return {
        "conv1_w": u(keys[0], (6, 1, 5, 5), 1 * 25),
        "conv1_b": u(keys[1], (6,), 1 * 25),
        "conv2_w": u(keys[2], (16, 6, 5, 5), 6 * 25),
        "conv2_b": u(keys[3], (16,), 6 * 25),
        "conv3_w": u(keys[4], (120, 16, 5, 5), 16 * 25),
        "conv3_b": u(keys[5], (120,), 16 * 25),
        "fc1_w": u(keys[6], (84, 120), 120),
        "fc1_b": u(keys[7], (84,), 120),
        "fc2_w": u(keys[8], (10, 84), 84),
        "fc2_b": u(keys[9], (10,), 84),
    }


if __name__ == "__main__":
    key = jax.random.PRNGKey(0)
    k_params, k_x = jax.random.split(key)
    params = init_params(k_params)
    prep = prepare_params(params)     # one-time weight re-layout / bf16 cast
    # LeNet-5's Flatten -> Linear(120) requires 32x32 spatial input (NCHW).
    x = jax.random.normal(k_x, (2, 1, 32, 32), dtype=jnp.float32)
    logits = jax.jit(lenet5_forward)(prep, x)
    jax.block_until_ready(logits)
    assert logits.shape == (2, 10) and logits.dtype == jnp.float32
    print("KERNEL_OK")
</pallas_src>

<mosaic_0001>
module attributes {stable_mosaic.version = 11 : i64} {
  func.func @_lenet5_kernel(%arg0: memref<2x1x32x32xf32, #tpu.memory_space<vmem>>, %arg1: memref<5x32x168xbf16, #tpu.memory_space<vmem>>, %arg2: memref<1x84xf32, #tpu.memory_space<vmem>>, %arg3: memref<5x84x160xbf16, #tpu.memory_space<vmem>>, %arg4: memref<1x80xf32, #tpu.memory_space<vmem>>, %arg5: memref<5x80x120xbf16, #tpu.memory_space<vmem>>, %arg6: memref<1x120xf32, #tpu.memory_space<vmem>>, %arg7: memref<120x84xbf16, #tpu.memory_space<vmem>>, %arg8: memref<1x84xf32, #tpu.memory_space<vmem>>, %arg9: memref<84x10xbf16, #tpu.memory_space<vmem>>, %arg10: memref<1x10xf32, #tpu.memory_space<vmem>>, %arg11: memref<14x28xf32, #tpu.memory_space<vmem>>, %arg12: memref<168x84xf32, #tpu.memory_space<vmem>>, %arg13: memref<5x10xf32, #tpu.memory_space<vmem>>, %arg14: memref<160x80xf32, #tpu.memory_space<vmem>>, %arg15: memref<2x10xf32, #tpu.memory_space<vmem>>) attributes {dimension_semantics = [], scalar_prefetch = 0 : i64, scratch_operands = 0 : i64, tpu.core_type = #tpu.core_type<tc>} {
    %c0 = arith.constant 0 : index
    %c0_0 = arith.constant 0 : index
    %0 = vector.load %arg11[%c0, %c0_0] : memref<14x28xf32, #tpu.memory_space<vmem>>, vector<14x28xf32>
    %c0_1 = arith.constant 0 : index
    %c0_2 = arith.constant 0 : index
    %1 = vector.load %arg12[%c0_1, %c0_2] : memref<168x84xf32, #tpu.memory_space<vmem>>, vector<168x84xf32>
    %c0_3 = arith.constant 0 : index
    %c0_4 = arith.constant 0 : index
    %2 = vector.load %arg13[%c0_3, %c0_4] : memref<5x10xf32, #tpu.memory_space<vmem>>, vector<5x10xf32>
    %c0_5 = arith.constant 0 : index
    %c0_6 = arith.constant 0 : index
    %3 = vector.load %arg14[%c0_5, %c0_6] : memref<160x80xf32, #tpu.memory_space<vmem>>, vector<160x80xf32>
    %c0_7 = arith.constant 0 : index
    %c0_8 = arith.constant 0 : index
    %c0_9 = arith.constant 0 : index
    %c0_10 = arith.constant 0 : index
    %4 = vector.load %arg0[%c0_7, %c0_8, %c0_9, %c0_10] : memref<2x1x32x32xf32, #tpu.memory_space<vmem>>, vector<1x1x32x32xf32>
    %5 = vector.shape_cast %4 : vector<1x1x32x32xf32> to vector<32x32xf32>
    %cst = arith.constant 0.000000e+00 : f32
    %6 = vector.broadcast %cst : f32 to vector<28x168xf32>
    %7 = vector.extract_strided_slice %5 {offsets = [0, 0], sizes = [28, 32], strides = [1, 1]} : vector<32x32xf32> to vector<28x32xf32>
    %8 = arith.truncf %7 : vector<28x32xf32> to vector<28x32xbf16>
    %c0_11 = arith.constant 0 : index
    %c0_12 = arith.constant 0 : index
    %c0_13 = arith.constant 0 : index
    %9 = vector.load %arg1[%c0_11, %c0_12, %c0_13] : memref<5x32x168xbf16, #tpu.memory_space<vmem>>, vector<1x32x168xbf16>
    %10 = vector.shape_cast %9 : vector<1x32x168xbf16> to vector<32x168xbf16>
    %cst_14 = arith.constant dense<0.000000e+00> : vector<28x168xf32>
    %11 = tpu.matmul %8, %10, %cst_14 {dimension_numbers = #tpu.dot_dimension_numbers<[1], [0], [0], [1], [0, 0, 1, 1], [], []>} : vector<28x32xbf16>, vector<32x168xbf16>, vector<28x168xf32> -> vector<28x168xf32>
    %12 = arith.addf %6, %11 : vector<28x168xf32>
    %13 = vector.extract_strided_slice %5 {offsets = [1, 0], sizes = [28, 32], strides = [1, 1]} : vector<32x32xf32> to vector<28x32xf32>
    %14 = arith.truncf %13 : vector<28x32xf32> to vector<28x32xbf16>
    %c1 = arith.constant 1 : index
    %c0_15 = arith.constant 0 : index
    %c0_16 = arith.constant 0 : index
    %15 = vector.load %arg1[%c1, %c0_15, %c0_16] : memref<5x32x168xbf16, #tpu.memory_space<vmem>>, vector<1x32x168xbf16>
    %16 = vector.shape_cast %15 : vector<1x32x168xbf16> to vector<32x168xbf16>
    %cst_17 = arith.constant dense<0.000000e+00> : vector<28x168xf32>
    %17 = tpu.matmul %14, %16, %cst_17 {dimension_numbers = #tpu.dot_dimension_numbers<[1], [0], [0], [1], [0, 0, 1, 1], [], []>} : vector<28x32xbf16>, vector<32x168xbf16>, vector<28x168xf32> -> vector<28x168xf32>
    %18 = arith.addf %12, %17 : vector<28x168xf32>
    %19 = vector.extract_strided_slice %5 {offsets = [2, 0], sizes = [28, 32], strides = [1, 1]} : vector<32x32xf32> to vector<28x32xf32>
    %20 = arith.truncf %19 : vector<28x32xf32> to vector<28x32xbf16>
    %c2 = arith.constant 2 : index
    %c0_18 = arith.constant 0 : index
    %c0_19 = arith.constant 0 : index
    %21 = vector.load %arg1[%c2, %c0_18, %c0_19] : memref<5x32x168xbf16, #tpu.memory_space<vmem>>, vector<1x32x168xbf16>
    %22 = vector.shape_cast %21 : vector<1x32x168xbf16> to vector<32x168xbf16>
    %cst_20 = arith.constant dense<0.000000e+00> : vector<28x168xf32>
    %23 = tpu.matmul %20, %22, %cst_20 {dimension_numbers = #tpu.dot_dimension_numbers<[1], [0], [0], [1], [0, 0, 1, 1], [], []>} : vector<28x32xbf16>, vector<32x168xbf16>, vector<28x168xf32> -> vector<28x168xf32>
    %24 = arith.addf %18, %23 : vector<28x168xf32>
    %25 = vector.extract_strided_slice %5 {offsets = [3, 0], sizes = [28, 32], strides = [1, 1]} : vector<32x32xf32> to vector<28x32xf32>
    %26 = arith.truncf %25 : vector<28x32xf32> to vector<28x32xbf16>
    %c3 = arith.constant 3 : index
    %c0_21 = arith.constant 0 : index
    %c0_22 = arith.constant 0 : index
    %27 = vector.load %arg1[%c3, %c0_21, %c0_22] : memref<5x32x168xbf16, #tpu.memory_space<vmem>>, vector<1x32x168xbf16>
    %28 = vector.shape_cast %27 : vector<1x32x168xbf16> to vector<32x168xbf16>
    %cst_23 = arith.constant dense<0.000000e+00> : vector<28x168xf32>
    %29 = tpu.matmul %26, %28, %cst_23 {dimension_numbers = #tpu.dot_dimension_numbers<[1], [0], [0], [1], [0, 0, 1, 1], [], []>} : vector<28x32xbf16>, vector<32x168xbf16>, vector<28x168xf32> -> vector<28x168xf32>
    %30 = arith.addf %24, %29 : vector<28x168xf32>
    %31 = vector.extract_strided_slice %5 {offsets = [4, 0], sizes = [28, 32], strides = [1, 1]} : vector<32x32xf32> to vector<28x32xf32>
    %32 = arith.truncf %31 : vector<28x32xf32> to vector<28x32xbf16>
    %c4 = arith.constant 4 : index
    %c0_24 = arith.constant 0 : index
    %c0_25 = arith.constant 0 : index
    %33 = vector.load %arg1[%c4, %c0_24, %c0_25] : memref<5x32x168xbf16, #tpu.memory_space<vmem>>, vector<1x32x168xbf16>
    %34 = vector.shape_cast %33 : vector<1x32x168xbf16> to vector<32x168xbf16>
    %cst_26 = arith.constant dense<0.000000e+00> : vector<28x168xf32>
    %35 = tpu.matmul %32, %34, %cst_26 {dimension_numbers = #tpu.dot_dimension_numbers<[1], [0], [0], [1], [0, 0, 1, 1], [], []>} : vector<28x32xbf16>, vector<32x168xbf16>, vector<28x168xf32> -> vector<28x168xf32>
    %36 = arith.addf %30, %35 : vector<28x168xf32>
    %cst_27 = arith.constant dense<0.000000e+00> : vector<14x168xf32>
    %37 = tpu.matmul %0, %36, %cst_27 {dimension_numbers = #tpu.dot_dimension_numbers<[1], [0], [0], [1], [0, 0, 1, 1], [], []>} : vector<14x28xf32>, vector<28x168xf32>, vector<14x168xf32> -> vector<14x168xf32>
    %cst_28 = arith.constant dense<0.000000e+00> : vector<14x84xf32>
    %38 = tpu.matmul %37, %1, %cst_28 {dimension_numbers = #tpu.dot_dimension_numbers<[1], [0], [0], [1], [0, 0, 1, 1], [], []>} : vector<14x168xf32>, vector<168x84xf32>, vector<14x84xf32> -> vector<14x84xf32>
    %c0_29 = arith.constant 0 : index
    %c0_30 = arith.constant 0 : index
    %39 = vector.load %arg2[%c0_29, %c0_30] : memref<1x84xf32, #tpu.memory_space<vmem>>, vector<1x84xf32>
    %40 = vector.broadcast %39 : vector<1x84xf32> to vector<14x84xf32>
    %41 = arith.addf %38, %40 : vector<14x84xf32>
    %42 = math.tanh %41 : vector<14x84xf32>
    %cst_31 = arith.constant 0.000000e+00 : f32
    %43 = vector.broadcast %cst_31 : f32 to vector<10x160xf32>
    %44 = vector.extract_strided_slice %42 {offsets = [0, 0], sizes = [10, 84], strides = [1, 1]} : vector<14x84xf32> to vector<10x84xf32>
    %45 = arith.truncf %44 : vector<10x84xf32> to vector<10x84xbf16>
    %c0_32 = arith.constant 0 : index
    %c0_33 = arith.constant 0 : index
    %c0_34 = arith.constant 0 : index
    %46 = vector.load %arg3[%c0_32, %c0_33, %c0_34] : memref<5x84x160xbf16, #tpu.memory_space<vmem>>, vector<1x84x160xbf16>
    %47 = vector.shape_cast %46 : vector<1x84x160xbf16> to vector<84x160xbf16>
    %cst_35 = arith.constant dense<0.000000e+00> : vector<10x160xf32>
    %48 = tpu.matmul %45, %47, %cst_35 {dimension_numbers = #tpu.dot_dimension_numbers<[1], [0], [0], [1], [0, 0, 1, 1], [], []>} : vector<10x84xbf16>, vector<84x160xbf16>, vector<10x160xf32> -> vector<10x160xf32>
    %49 = arith.addf %43, %48 : vector<10x160xf32>
    %50 = vector.extract_strided_slice %42 {offsets = [1, 0], sizes = [10, 84], strides = [1, 1]} : vector<14x84xf32> to vector<10x84xf32>
    %51 = arith.truncf %50 : vector<10x84xf32> to vector<10x84xbf16>
    %c1_36 = arith.constant 1 : index
    %c0_37 = arith.constant 0 : index
    %c0_38 = arith.constant 0 : index
    %52 = vector.load %arg3[%c1_36, %c0_37, %c0_38] : memref<5x84x160xbf16, #tpu.memory_space<vmem>>, vector<1x84x160xbf16>
    %53 = vector.shape_cast %52 : vector<1x84x160xbf16> to vector<84x160xbf16>
    %cst_39 = arith.constant dense<0.000000e+00> : vector<10x160xf32>
    %54 = tpu.matmul %51, %53, %cst_39 {dimension_numbers = #tpu.dot_dimension_numbers<[1], [0], [0], [1], [0, 0, 1, 1], [], []>} : vector<10x84xbf16>, vector<84x160xbf16>, vector<10x160xf32> -> vector<10x160xf32>
    %55 = arith.addf %49, %54 : vector<10x160xf32>
    %56 = vector.extract_strided_slice %42 {offsets = [2, 0], sizes = [10, 84], strides = [1, 1]} : vector<14x84xf32> to vector<10x84xf32>
    %57 = arith.truncf %56 : vector<10x84xf32> to vector<10x84xbf16>
    %c2_40 = arith.constant 2 : index
    %c0_41 = arith.constant 0 : index
    %c0_42 = arith.constant 0 : index
    %58 = vector.load %arg3[%c2_40, %c0_41, %c0_42] : memref<5x84x160xbf16, #tpu.memory_space<vmem>>, vector<1x84x160xbf16>
    %59 = vector.shape_cast %58 : vector<1x84x160xbf16> to vector<84x160xbf16>
    %cst_43 = arith.constant dense<0.000000e+00> : vector<10x160xf32>
    %60 = tpu.matmul %57, %59, %cst_43 {dimension_numbers = #tpu.dot_dimension_numbers<[1], [0], [0], [1], [0, 0, 1, 1], [], []>} : vector<10x84xbf16>, vector<84x160xbf16>, vector<10x160xf32> -> vector<10x160xf32>
    %61 = arith.addf %55, %60 : vector<10x160xf32>
    %62 = vector.extract_strided_slice %42 {offsets = [3, 0], sizes = [10, 84], strides = [1, 1]} : vector<14x84xf32> to vector<10x84xf32>
    %63 = arith.truncf %62 : vector<10x84xf32> to vector<10x84xbf16>
    %c3_44 = arith.constant 3 : index
    %c0_45 = arith.constant 0 : index
    %c0_46 = arith.constant 0 : index
    %64 = vector.load %arg3[%c3_44, %c0_45, %c0_46] : memref<5x84x160xbf16, #tpu.memory_space<vmem>>, vector<1x84x160xbf16>
    %65 = vector.shape_cast %64 : vector<1x84x160xbf16> to vector<84x160xbf16>
    %cst_47 = arith.constant dense<0.000000e+00> : vector<10x160xf32>
    %66 = tpu.matmul %63, %65, %cst_47 {dimension_numbers = #tpu.dot_dimension_numbers<[1], [0], [0], [1], [0, 0, 1, 1], [], []>} : vector<10x84xbf16>, vector<84x160xbf16>, vector<10x160xf32> -> vector<10x160xf32>
    %67 = arith.addf %61, %66 : vector<10x160xf32>
    %68 = vector.extract_strided_slice %42 {offsets = [4, 0], sizes = [10, 84], strides = [1, 1]} : vector<14x84xf32> to vector<10x84xf32>
    %69 = arith.truncf %68 : vector<10x84xf32> to vector<10x84xbf16>
    %c4_48 = arith.constant 4 : index
    %c0_49 = arith.constant 0 : index
    %c0_50 = arith.constant 0 : index
    %70 = vector.load %arg3[%c4_48, %c0_49, %c0_50] : memref<5x84x160xbf16, #tpu.memory_space<vmem>>, vector<1x84x160xbf16>
    %71 = vector.shape_cast %70 : vector<1x84x160xbf16> to vector<84x160xbf16>
    %cst_51 = arith.constant dense<0.000000e+00> : vector<10x160xf32>
    %72 = tpu.matmul %69, %71, %cst_51 {dimension_numbers = #tpu.dot_dimension_numbers<[1], [0], [0], [1], [0, 0, 1, 1], [], []>} : vector<10x84xbf16>, vector<84x160xbf16>, vector<10x160xf32> -> vector<10x160xf32>
    %73 = arith.addf %67, %72 : vector<10x160xf32>
    %cst_52 = arith.constant dense<0.000000e+00> : vector<5x160xf32>
    %74 = tpu.matmul %2, %73, %cst_52 {dimension_numbers = #tpu.dot_dimension_numbers<[1], [0], [0], [1], [0, 0, 1, 1], [], []>} : vector<5x10xf32>, vector<10x160xf32>, vector<5x160xf32> -> vector<5x160xf32>
    %cst_53 = arith.constant dense<0.000000e+00> : vector<5x80xf32>
    %75 = tpu.matmul %74, %3, %cst_53 {dimension_numbers = #tpu.dot_dimension_numbers<[1], [0], [0], [1], [0, 0, 1, 1], [], []>} : vector<5x160xf32>, vector<160x80xf32>, vector<5x80xf32> -> vector<5x80xf32>
    %c0_54 = arith.constant 0 : index
    %c0_55 = arith.constant 0 : index
    %76 = vector.load %arg4[%c0_54, %c0_55] : memref<1x80xf32, #tpu.memory_space<vmem>>, vector<1x80xf32>
    %77 = vector.broadcast %76 : vector<1x80xf32> to vector<5x80xf32>
    %78 = arith.addf %75, %77 : vector<5x80xf32>
    %79 = math.tanh %78 : vector<5x80xf32>
    %cst_56 = arith.constant 0.000000e+00 : f32
    %80 = vector.broadcast %cst_56 : f32 to vector<1x120xf32>
    %81 = vector.extract_strided_slice %79 {offsets = [0, 0], sizes = [1, 80], strides = [1, 1]} : vector<5x80xf32> to vector<1x80xf32>
    %82 = arith.truncf %81 : vector<1x80xf32> to vector<1x80xbf16>
    %c0_57 = arith.constant 0 : index
    %c0_58 = arith.constant 0 : index
    %c0_59 = arith.constant 0 : index
    %83 = vector.load %arg5[%c0_57, %c0_58, %c0_59] : memref<5x80x120xbf16, #tpu.memory_space<vmem>>, vector<1x80x120xbf16>
    %84 = vector.shape_cast %83 : vector<1x80x120xbf16> to vector<80x120xbf16>
    %cst_60 = arith.constant dense<0.000000e+00> : vector<1x120xf32>
    %85 = tpu.matmul %82, %84, %cst_60 {dimension_numbers = #tpu.dot_dimension_numbers<[1], [0], [0], [1], [0, 0, 1, 1], [], []>} : vector<1x80xbf16>, vector<80x120xbf16>, vector<1x120xf32> -> vector<1x120xf32>
    %86 = arith.addf %80, %85 : vector<1x120xf32>
    %87 = vector.extract_strided_slice %79 {offsets = [1, 0], sizes = [1, 80], strides = [1, 1]} : vector<5x80xf32> to vector<1x80xf32>
    %88 = arith.truncf %87 : vector<1x80xf32> to vector<1x80xbf16>
    %c1_61 = arith.constant 1 : index
    %c0_62 = arith.constant 0 : index
    %c0_63 = arith.constant 0 : index
    %89 = vector.load %arg5[%c1_61, %c0_62, %c0_63] : memref<5x80x120xbf16, #tpu.memory_space<vmem>>, vector<1x80x120xbf16>
    %90 = vector.shape_cast %89 : vector<1x80x120xbf16> to vector<80x120xbf16>
    %cst_64 = arith.constant dense<0.000000e+00> : vector<1x120xf32>
    %91 = tpu.matmul %88, %90, %cst_64 {dimension_numbers = #tpu.dot_dimension_numbers<[1], [0], [0], [1], [0, 0, 1, 1], [], []>} : vector<1x80xbf16>, vector<80x120xbf16>, vector<1x120xf32> -> vector<1x120xf32>
    %92 = arith.addf %86, %91 : vector<1x120xf32>
    %93 = vector.extract_strided_slice %79 {offsets = [2, 0], sizes = [1, 80], strides = [1, 1]} : vector<5x80xf32> to vector<1x80xf32>
    %94 = arith.truncf %93 : vector<1x80xf32> to vector<1x80xbf16>
    %c2_65 = arith.constant 2 : index
    %c0_66 = arith.constant 0 : index
    %c0_67 = arith.constant 0 : index
    %95 = vector.load %arg5[%c2_65, %c0_66, %c0_67] : memref<5x80x120xbf16, #tpu.memory_space<vmem>>, vector<1x80x120xbf16>
    %96 = vector.shape_cast %95 : vector<1x80x120xbf16> to vector<80x120xbf16>
    %cst_68 = arith.constant dense<0.000000e+00> : vector<1x120xf32>
    %97 = tpu.matmul %94, %96, %cst_68 {dimension_numbers = #tpu.dot_dimension_numbers<[1], [0], [0], [1], [0, 0, 1, 1], [], []>} : vector<1x80xbf16>, vector<80x120xbf16>, vector<1x120xf32> -> vector<1x120xf32>
    %98 = arith.addf %92, %97 : vector<1x120xf32>
    %99 = vector.extract_strided_slice %79 {offsets = [3, 0], sizes = [1, 80], strides = [1, 1]} : vector<5x80xf32> to vector<1x80xf32>
    %100 = arith.truncf %99 : vector<1x80xf32> to vector<1x80xbf16>
    %c3_69 = arith.constant 3 : index
    %c0_70 = arith.constant 0 : index
    %c0_71 = arith.constant 0 : index
    %101 = vector.load %arg5[%c3_69, %c0_70, %c0_71] : memref<5x80x120xbf16, #tpu.memory_space<vmem>>, vector<1x80x120xbf16>
    %102 = vector.shape_cast %101 : vector<1x80x120xbf16> to vector<80x120xbf16>
    %cst_72 = arith.constant dense<0.000000e+00> : vector<1x120xf32>
    %103 = tpu.matmul %100, %102, %cst_72 {dimension_numbers = #tpu.dot_dimension_numbers<[1], [0], [0], [1], [0, 0, 1, 1], [], []>} : vector<1x80xbf16>, vector<80x120xbf16>, vector<1x120xf32> -> vector<1x120xf32>
    %104 = arith.addf %98, %103 : vector<1x120xf32>
    %105 = vector.extract_strided_slice %79 {offsets = [4, 0], sizes = [1, 80], strides = [1, 1]} : vector<5x80xf32> to vector<1x80xf32>
    %106 = arith.truncf %105 : vector<1x80xf32> to vector<1x80xbf16>
    %c4_73 = arith.constant 4 : index
    %c0_74 = arith.constant 0 : index
    %c0_75 = arith.constant 0 : index
    %107 = vector.load %arg5[%c4_73, %c0_74, %c0_75] : memref<5x80x120xbf16, #tpu.memory_space<vmem>>, vector<1x80x120xbf16>
    %108 = vector.shape_cast %107 : vector<1x80x120xbf16> to vector<80x120xbf16>
    %cst_76 = arith.constant dense<0.000000e+00> : vector<1x120xf32>
    %109 = tpu.matmul %106, %108, %cst_76 {dimension_numbers = #tpu.dot_dimension_numbers<[1], [0], [0], [1], [0, 0, 1, 1], [], []>} : vector<1x80xbf16>, vector<80x120xbf16>, vector<1x120xf32> -> vector<1x120xf32>
    %110 = arith.addf %104, %109 : vector<1x120xf32>
    %c0_77 = arith.constant 0 : index
    %c0_78 = arith.constant 0 : index
    %111 = vector.load %arg6[%c0_77, %c0_78] : memref<1x120xf32, #tpu.memory_space<vmem>>, vector<1x120xf32>
    %112 = arith.addf %110, %111 : vector<1x120xf32>
    %113 = arith.truncf %112 : vector<1x120xf32> to vector<1x120xbf16>
    %c0_79 = arith.constant 0 : index
    %c0_80 = arith.constant 0 : index
    %114 = vector.load %arg7[%c0_79, %c0_80] : memref<120x84xbf16, #tpu.memory_space<vmem>>, vector<120x84xbf16>
    %cst_81 = arith.constant dense<0.000000e+00> : vector<1x84xf32>
    %115 = tpu.matmul %113, %114, %cst_81 {dimension_numbers = #tpu.dot_dimension_numbers<[1], [0], [0], [1], [0, 0, 1, 1], [], []>} : vector<1x120xbf16>, vector<120x84xbf16>, vector<1x84xf32> -> vector<1x84xf32>
    %c0_82 = arith.constant 0 : index
    %c0_83 = arith.constant 0 : index
    %116 = vector.load %arg8[%c0_82, %c0_83] : memref<1x84xf32, #tpu.memory_space<vmem>>, vector<1x84xf32>
    %117 = arith.addf %115, %116 : vector<1x84xf32>
    %118 = math.tanh %117 : vector<1x84xf32>
    %119 = arith.truncf %118 : vector<1x84xf32> to vector<1x84xbf16>
    %c0_84 = arith.constant 0 : index
    %c0_85 = arith.constant 0 : index
    %120 = vector.load %arg9[%c0_84, %c0_85] : memref<84x10xbf16, #tpu.memory_space<vmem>>, vector<84x10xbf16>
    %cst_86 = arith.constant dense<0.000000e+00> : vector<1x10xf32>
    %121 = tpu.matmul %119, %120, %cst_86 {dimension_numbers = #tpu.dot_dimension_numbers<[1], [0], [0], [1], [0, 0, 1, 1], [], []>} : vector<1x84xbf16>, vector<84x10xbf16>, vector<1x10xf32> -> vector<1x10xf32>
    %c0_87 = arith.constant 0 : index
    %c0_88 = arith.constant 0 : index
    %122 = vector.load %arg10[%c0_87, %c0_88] : memref<1x10xf32, #tpu.memory_space<vmem>>, vector<1x10xf32>
    %123 = arith.addf %121, %122 : vector<1x10xf32>
    %c0_89 = arith.constant 0 : index
    %c0_90 = arith.constant 0 : index
    %124 = vector.load %arg15[%c0_89, %c0_90] : memref<2x10xf32, #tpu.memory_space<vmem>>, vector<1x10xf32>
    tpu.vector_store %arg15[%c0_89, %c0_90], %123 {strides = array<i32>} : memref<2x10xf32, #tpu.memory_space<vmem>>, vector<1x10xf32>,
    %c1_91 = arith.constant 1 : index
    %c0_92 = arith.constant 0 : index
    %c0_93 = arith.constant 0 : index
    %c0_94 = arith.constant 0 : index
    %125 = vector.load %arg0[%c1_91, %c0_92, %c0_93, %c0_94] : memref<2x1x32x32xf32, #tpu.memory_space<vmem>>, vector<1x1x32x32xf32>
    %126 = vector.shape_cast %125 : vector<1x1x32x32xf32> to vector<32x32xf32>
    %cst_95 = arith.constant 0.000000e+00 : f32
    %127 = vector.broadcast %cst_95 : f32 to vector<28x168xf32>
    %128 = vector.extract_strided_slice %126 {offsets = [0, 0], sizes = [28, 32], strides = [1, 1]} : vector<32x32xf32> to vector<28x32xf32>
    %129 = arith.truncf %128 : vector<28x32xf32> to vector<28x32xbf16>
    %c0_96 = arith.constant 0 : index
    %c0_97 = arith.constant 0 : index
    %c0_98 = arith.constant 0 : index
    %130 = vector.load %arg1[%c0_96, %c0_97, %c0_98] : memref<5x32x168xbf16, #tpu.memory_space<vmem>>, vector<1x32x168xbf16>
    %131 = vector.shape_cast %130 : vector<1x32x168xbf16> to vector<32x168xbf16>
    %cst_99 = arith.constant dense<0.000000e+00> : vector<28x168xf32>
    %132 = tpu.matmul %129, %131, %cst_99 {dimension_numbers = #tpu.dot_dimension_numbers<[1], [0], [0], [1], [0, 0, 1, 1], [], []>} : vector<28x32xbf16>, vector<32x168xbf16>, vector<28x168xf32> -> vector<28x168xf32>
    %133 = arith.addf %127, %132 : vector<28x168xf32>
    %134 = vector.extract_strided_slice %126 {offsets = [1, 0], sizes = [28, 32], strides = [1, 1]} : vector<32x32xf32> to vector<28x32xf32>
    %135 = arith.truncf %134 : vector<28x32xf32> to vector<28x32xbf16>
    %c1_100 = arith.constant 1 : index
    %c0_101 = arith.constant 0 : index
    %c0_102 = arith.constant 0 : index
    %136 = vector.load %arg1[%c1_100, %c0_101, %c0_102] : memref<5x32x168xbf16, #tpu.memory_space<vmem>>, vector<1x32x168xbf16>
    %137 = vector.shape_cast %136 : vector<1x32x168xbf16> to vector<32x168xbf16>
    %cst_103 = arith.constant dense<0.000000e+00> : vector<28x168xf32>
    %138 = tpu.matmul %135, %137, %cst_103 {dimension_numbers = #tpu.dot_dimension_numbers<[1], [0], [0], [1], [0, 0, 1, 1], [], []>} : vector<28x32xbf16>, vector<32x168xbf16>, vector<28x168xf32> -> vector<28x168xf32>
    %139 = arith.addf %133, %138 : vector<28x168xf32>
    %140 = vector.extract_strided_slice %126 {offsets = [2, 0], sizes = [28, 32], strides = [1, 1]} : vector<32x32xf32> to vector<28x32xf32>
    %141 = arith.truncf %140 : vector<28x32xf32> to vector<28x32xbf16>
    %c2_104 = arith.constant 2 : index
    %c0_105 = arith.constant 0 : index
    %c0_106 = arith.constant 0 : index
    %142 = vector.load %arg1[%c2_104, %c0_105, %c0_106] : memref<5x32x168xbf16, #tpu.memory_space<vmem>>, vector<1x32x168xbf16>
    %143 = vector.shape_cast %142 : vector<1x32x168xbf16> to vector<32x168xbf16>
    %cst_107 = arith.constant dense<0.000000e+00> : vector<28x168xf32>
    %144 = tpu.matmul %141, %143, %cst_107 {dimension_numbers = #tpu.dot_dimension_numbers<[1], [0], [0], [1], [0, 0, 1, 1], [], []>} : vector<28x32xbf16>, vector<32x168xbf16>, vector<28x168xf32> -> vector<28x168xf32>
    %145 = arith.addf %139, %144 : vector<28x168xf32>
    %146 = vector.extract_strided_slice %126 {offsets = [3, 0], sizes = [28, 32], strides = [1, 1]} : vector<32x32xf32> to vector<28x32xf32>
    %147 = arith.truncf %146 : vector<28x32xf32> to vector<28x32xbf16>
    %c3_108 = arith.constant 3 : index
    %c0_109 = arith.constant 0 : index
    %c0_110 = arith.constant 0 : index
    %148 = vector.load %arg1[%c3_108, %c0_109, %c0_110] : memref<5x32x168xbf16, #tpu.memory_space<vmem>>, vector<1x32x168xbf16>
    %149 = vector.shape_cast %148 : vector<1x32x168xbf16> to vector<32x168xbf16>
    %cst_111 = arith.constant dense<0.000000e+00> : vector<28x168xf32>
    %150 = tpu.matmul %147, %149, %cst_111 {dimension_numbers = #tpu.dot_dimension_numbers<[1], [0], [0], [1], [0, 0, 1, 1], [], []>} : vector<28x32xbf16>, vector<32x168xbf16>, vector<28x168xf32> -> vector<28x168xf32>
    %151 = arith.addf %145, %150 : vector<28x168xf32>
    %152 = vector.extract_strided_slice %126 {offsets = [4, 0], sizes = [28, 32], strides = [1, 1]} : vector<32x32xf32> to vector<28x32xf32>
    %153 = arith.truncf %152 : vector<28x32xf32> to vector<28x32xbf16>
    %c4_112 = arith.constant 4 : index
    %c0_113 = arith.constant 0 : index
    %c0_114 = arith.constant 0 : index
    %154 = vector.load %arg1[%c4_112, %c0_113, %c0_114] : memref<5x32x168xbf16, #tpu.memory_space<vmem>>, vector<1x32x168xbf16>
    %155 = vector.shape_cast %154 : vector<1x32x168xbf16> to vector<32x168xbf16>
    %cst_115 = arith.constant dense<0.000000e+00> : vector<28x168xf32>
    %156 = tpu.matmul %153, %155, %cst_115 {dimension_numbers = #tpu.dot_dimension_numbers<[1], [0], [0], [1], [0, 0, 1, 1], [], []>} : vector<28x32xbf16>, vector<32x168xbf16>, vector<28x168xf32> -> vector<28x168xf32>
    %157 = arith.addf %151, %156 : vector<28x168xf32>
    %cst_116 = arith.constant dense<0.000000e+00> : vector<14x168xf32>
    %158 = tpu.matmul %0, %157, %cst_116 {dimension_numbers = #tpu.dot_dimension_numbers<[1], [0], [0], [1], [0, 0, 1, 1], [], []>} : vector<14x28xf32>, vector<28x168xf32>, vector<14x168xf32> -> vector<14x168xf32>
    %cst_117 = arith.constant dense<0.000000e+00> : vector<14x84xf32>
    %159 = tpu.matmul %158, %1, %cst_117 {dimension_numbers = #tpu.dot_dimension_numbers<[1], [0], [0], [1], [0, 0, 1, 1], [], []>} : vector<14x168xf32>, vector<168x84xf32>, vector<14x84xf32> -> vector<14x84xf32>
    %c0_118 = arith.constant 0 : index
    %c0_119 = arith.constant 0 : index
    %160 = vector.load %arg2[%c0_118, %c0_119] : memref<1x84xf32, #tpu.memory_space<vmem>>, vector<1x84xf32>
    %161 = vector.broadcast %160 : vector<1x84xf32> to vector<14x84xf32>
    %162 = arith.addf %159, %161 : vector<14x84xf32>
    %163 = math.tanh %162 : vector<14x84xf32>
    %cst_120 = arith.constant 0.000000e+00 : f32
    %164 = vector.broadcast %cst_120 : f32 to vector<10x160xf32>
    %165 = vector.extract_strided_slice %163 {offsets = [0, 0], sizes = [10, 84], strides = [1, 1]} : vector<14x84xf32> to vector<10x84xf32>
    %166 = arith.truncf %165 : vector<10x84xf32> to vector<10x84xbf16>
    %c0_121 = arith.constant 0 : index
    %c0_122 = arith.constant 0 : index
    %c0_123 = arith.constant 0 : index
    %167 = vector.load %arg3[%c0_121, %c0_122, %c0_123] : memref<5x84x160xbf16, #tpu.memory_space<vmem>>, vector<1x84x160xbf16>
    %168 = vector.shape_cast %167 : vector<1x84x160xbf16> to vector<84x160xbf16>
    %cst_124 = arith.constant dense<0.000000e+00> : vector<10x160xf32>
    %169 = tpu.matmul %166, %168, %cst_124 {dimension_numbers = #tpu.dot_dimension_numbers<[1], [0], [0], [1], [0, 0, 1, 1], [], []>} : vector<10x84xbf16>, vector<84x160xbf16>, vector<10x160xf32> -> vector<10x160xf32>
    %170 = arith.addf %164, %169 : vector<10x160xf32>
    %171 = vector.extract_strided_slice %163 {offsets = [1, 0], sizes = [10, 84], strides = [1, 1]} : vector<14x84xf32> to vector<10x84xf32>
    %172 = arith.truncf %171 : vector<10x84xf32> to vector<10x84xbf16>
    %c1_125 = arith.constant 1 : index
    %c0_126 = arith.constant 0 : index
    %c0_127 = arith.constant 0 : index
    %173 = vector.load %arg3[%c1_125, %c0_126, %c0_127] : memref<5x84x160xbf16, #tpu.memory_space<vmem>>, vector<1x84x160xbf16>
    %174 = vector.shape_cast %173 : vector<1x84x160xbf16> to vector<84x160xbf16>
    %cst_128 = arith.constant dense<0.000000e+00> : vector<10x160xf32>
    %175 = tpu.matmul %172, %174, %cst_128 {dimension_numbers = #tpu.dot_dimension_numbers<[1], [0], [0], [1], [0, 0, 1, 1], [], []>} : vector<10x84xbf16>, vector<84x160xbf16>, vector<10x160xf32> -> vector<10x160xf32>
    %176 = arith.addf %170, %175 : vector<10x160xf32>
    %177 = vector.extract_strided_slice %163 {offsets = [2, 0], sizes = [10, 84], strides = [1, 1]} : vector<14x84xf32> to vector<10x84xf32>
    %178 = arith.truncf %177 : vector<10x84xf32> to vector<10x84xbf16>
    %c2_129 = arith.constant 2 : index
    %c0_130 = arith.constant 0 : index
    %c0_131 = arith.constant 0 : index
    %179 = vector.load %arg3[%c2_129, %c0_130, %c0_131] : memref<5x84x160xbf16, #tpu.memory_space<vmem>>, vector<1x84x160xbf16>
    %180 = vector.shape_cast %179 : vector<1x84x160xbf16> to vector<84x160xbf16>
    %cst_132 = arith.constant dense<0.000000e+00> : vector<10x160xf32>
    %181 = tpu.matmul %178, %180, %cst_132 {dimension_numbers = #tpu.dot_dimension_numbers<[1], [0], [0], [1], [0, 0, 1, 1], [], []>} : vector<10x84xbf16>, vector<84x160xbf16>, vector<10x160xf32> -> vector<10x160xf32>
    %182 = arith.addf %176, %181 : vector<10x160xf32>
    %183 = vector.extract_strided_slice %163 {offsets = [3, 0], sizes = [10, 84], strides = [1, 1]} : vector<14x84xf32> to vector<10x84xf32>
    %184 = arith.truncf %183 : vector<10x84xf32> to vector<10x84xbf16>
    %c3_133 = arith.constant 3 : index
    %c0_134 = arith.constant 0 : index
    %c0_135 = arith.constant 0 : index
    %185 = vector.load %arg3[%c3_133, %c0_134, %c0_135] : memref<5x84x160xbf16, #tpu.memory_space<vmem>>, vector<1x84x160xbf16>
    %186 = vector.shape_cast %185 : vector<1x84x160xbf16> to vector<84x160xbf16>
    %cst_136 = arith.constant dense<0.000000e+00> : vector<10x160xf32>
    %187 = tpu.matmul %184, %186, %cst_136 {dimension_numbers = #tpu.dot_dimension_numbers<[1], [0], [0], [1], [0, 0, 1, 1], [], []>} : vector<10x84xbf16>, vector<84x160xbf16>, vector<10x160xf32> -> vector<10x160xf32>
    %188 = arith.addf %182, %187 : vector<10x160xf32>
    %189 = vector.extract_strided_slice %163 {offsets = [4, 0], sizes = [10, 84], strides = [1, 1]} : vector<14x84xf32> to vector<10x84xf32>
    %190 = arith.truncf %189 : vector<10x84xf32> to vector<10x84xbf16>
    %c4_137 = arith.constant 4 : index
    %c0_138 = arith.constant 0 : index
    %c0_139 = arith.constant 0 : index
    %191 = vector.load %arg3[%c4_137, %c0_138, %c0_139] : memref<5x84x160xbf16, #tpu.memory_space<vmem>>, vector<1x84x160xbf16>
    %192 = vector.shape_cast %191 : vector<1x84x160xbf16> to vector<84x160xbf16>
    %cst_140 = arith.constant dense<0.000000e+00> : vector<10x160xf32>
    %193 = tpu.matmul %190, %192, %cst_140 {dimension_numbers = #tpu.dot_dimension_numbers<[1], [0], [0], [1], [0, 0, 1, 1], [], []>} : vector<10x84xbf16>, vector<84x160xbf16>, vector<10x160xf32> -> vector<10x160xf32>
    %194 = arith.addf %188, %193 : vector<10x160xf32>
    %cst_141 = arith.constant dense<0.000000e+00> : vector<5x160xf32>
    %195 = tpu.matmul %2, %194, %cst_141 {dimension_numbers = #tpu.dot_dimension_numbers<[1], [0], [0], [1], [0, 0, 1, 1], [], []>} : vector<5x10xf32>, vector<10x160xf32>, vector<5x160xf32> -> vector<5x160xf32>
    %cst_142 = arith.constant dense<0.000000e+00> : vector<5x80xf32>
    %196 = tpu.matmul %195, %3, %cst_142 {dimension_numbers = #tpu.dot_dimension_numbers<[1], [0], [0], [1], [0, 0, 1, 1], [], []>} : vector<5x160xf32>, vector<160x80xf32>, vector<5x80xf32> -> vector<5x80xf32>
    %c0_143 = arith.constant 0 : index
    %c0_144 = arith.constant 0 : index
    %197 = vector.load %arg4[%c0_143, %c0_144] : memref<1x80xf32, #tpu.memory_space<vmem>>, vector<1x80xf32>
    %198 = vector.broadcast %197 : vector<1x80xf32> to vector<5x80xf32>
    %199 = arith.addf %196, %198 : vector<5x80xf32>
    %200 = math.tanh %199 : vector<5x80xf32>
    %cst_145 = arith.constant 0.000000e+00 : f32
    %201 = vector.broadcast %cst_145 : f32 to vector<1x120xf32>
    %202 = vector.extract_strided_slice %200 {offsets = [0, 0], sizes = [1, 80], strides = [1, 1]} : vector<5x80xf32> to vector<1x80xf32>
    %203 = arith.truncf %202 : vector<1x80xf32> to vector<1x80xbf16>
    %c0_146 = arith.constant 0 : index
    %c0_147 = arith.constant 0 : index
    %c0_148 = arith.constant 0 : index
    %204 = vector.load %arg5[%c0_146, %c0_147, %c0_148] : memref<5x80x120xbf16, #tpu.memory_space<vmem>>, vector<1x80x120xbf16>
    %205 = vector.shape_cast %204 : vector<1x80x120xbf16> to vector<80x120xbf16>
    %cst_149 = arith.constant dense<0.000000e+00> : vector<1x120xf32>
    %206 = tpu.matmul %203, %205, %cst_149 {dimension_numbers = #tpu.dot_dimension_numbers<[1], [0], [0], [1], [0, 0, 1, 1], [], []>} : vector<1x80xbf16>, vector<80x120xbf16>, vector<1x120xf32> -> vector<1x120xf32>
    %207 = arith.addf %201, %206 : vector<1x120xf32>
    %208 = vector.extract_strided_slice %200 {offsets = [1, 0], sizes = [1, 80], strides = [1, 1]} : vector<5x80xf32> to vector<1x80xf32>
    %209 = arith.truncf %208 : vector<1x80xf32> to vector<1x80xbf16>
    %c1_150 = arith.constant 1 : index
    %c0_151 = arith.constant 0 : index
    %c0_152 = arith.constant 0 : index
    %210 = vector.load %arg5[%c1_150, %c0_151, %c0_152] : memref<5x80x120xbf16, #tpu.memory_space<vmem>>, vector<1x80x120xbf16>
    %211 = vector.shape_cast %210 : vector<1x80x120xbf16> to vector<80x120xbf16>
    %cst_153 = arith.constant dense<0.000000e+00> : vector<1x120xf32>
    %212 = tpu.matmul %209, %211, %cst_153 {dimension_numbers = #tpu.dot_dimension_numbers<[1], [0], [0], [1], [0, 0, 1, 1], [], []>} : vector<1x80xbf16>, vector<80x120xbf16>, vector<1x120xf32> -> vector<1x120xf32>
    %213 = arith.addf %207, %212 : vector<1x120xf32>
    %214 = vector.extract_strided_slice %200 {offsets = [2, 0], sizes = [1, 80], strides = [1, 1]} : vector<5x80xf32> to vector<1x80xf32>
    %215 = arith.truncf %214 : vector<1x80xf32> to vector<1x80xbf16>
    %c2_154 = arith.constant 2 : index
    %c0_155 = arith.constant 0 : index
    %c0_156 = arith.constant 0 : index
    %216 = vector.load %arg5[%c2_154, %c0_155, %c0_156] : memref<5x80x120xbf16, #tpu.memory_space<vmem>>, vector<1x80x120xbf16>
    %217 = vector.shape_cast %216 : vector<1x80x120xbf16> to vector<80x120xbf16>
    %cst_157 = arith.constant dense<0.000000e+00> : vector<1x120xf32>
    %218 = tpu.matmul %215, %217, %cst_157 {dimension_numbers = #tpu.dot_dimension_numbers<[1], [0], [0], [1], [0, 0, 1, 1], [], []>} : vector<1x80xbf16>, vector<80x120xbf16>, vector<1x120xf32> -> vector<1x120xf32>
    %219 = arith.addf %213, %218 : vector<1x120xf32>
    %220 = vector.extract_strided_slice %200 {offsets = [3, 0], sizes = [1, 80], strides = [1, 1]} : vector<5x80xf32> to vector<1x80xf32>
    %221 = arith.truncf %220 : vector<1x80xf32> to vector<1x80xbf16>
    %c3_158 = arith.constant 3 : index
    %c0_159 = arith.constant 0 : index
    %c0_160 = arith.constant 0 : index
    %222 = vector.load %arg5[%c3_158, %c0_159, %c0_160] : memref<5x80x120xbf16, #tpu.memory_space<vmem>>, vector<1x80x120xbf16>
    %223 = vector.shape_cast %222 : vector<1x80x120xbf16> to vector<80x120xbf16>
    %cst_161 = arith.constant dense<0.000000e+00> : vector<1x120xf32>
    %224 = tpu.matmul %221, %223, %cst_161 {dimension_numbers = #tpu.dot_dimension_numbers<[1], [0], [0], [1], [0, 0, 1, 1], [], []>} : vector<1x80xbf16>, vector<80x120xbf16>, vector<1x120xf32> -> vector<1x120xf32>
    %225 = arith.addf %219, %224 : vector<1x120xf32>
    %226 = vector.extract_strided_slice %200 {offsets = [4, 0], sizes = [1, 80], strides = [1, 1]} : vector<5x80xf32> to vector<1x80xf32>
    %227 = arith.truncf %226 : vector<1x80xf32> to vector<1x80xbf16>
    %c4_162 = arith.constant 4 : index
    %c0_163 = arith.constant 0 : index
    %c0_164 = arith.constant 0 : index
    %228 = vector.load %arg5[%c4_162, %c0_163, %c0_164] : memref<5x80x120xbf16, #tpu.memory_space<vmem>>, vector<1x80x120xbf16>
    %229 = vector.shape_cast %228 : vector<1x80x120xbf16> to vector<80x120xbf16>
    %cst_165 = arith.constant dense<0.000000e+00> : vector<1x120xf32>
    %230 = tpu.matmul %227, %229, %cst_165 {dimension_numbers = #tpu.dot_dimension_numbers<[1], [0], [0], [1], [0, 0, 1, 1], [], []>} : vector<1x80xbf16>, vector<80x120xbf16>, vector<1x120xf32> -> vector<1x120xf32>
    %231 = arith.addf %225, %230 : vector<1x120xf32>
    %c0_166 = arith.constant 0 : index
    %c0_167 = arith.constant 0 : index
    %232 = vector.load %arg6[%c0_166, %c0_167] : memref<1x120xf32, #tpu.memory_space<vmem>>, vector<1x120xf32>
    %233 = arith.addf %231, %232 : vector<1x120xf32>
    %234 = arith.truncf %233 : vector<1x120xf32> to vector<1x120xbf16>
    %c0_168 = arith.constant 0 : index
    %c0_169 = arith.constant 0 : index
    %235 = vector.load %arg7[%c0_168, %c0_169] : memref<120x84xbf16, #tpu.memory_space<vmem>>, vector<120x84xbf16>
    %cst_170 = arith.constant dense<0.000000e+00> : vector<1x84xf32>
    %236 = tpu.matmul %234, %235, %cst_170 {dimension_numbers = #tpu.dot_dimension_numbers<[1], [0], [0], [1], [0, 0, 1, 1], [], []>} : vector<1x120xbf16>, vector<120x84xbf16>, vector<1x84xf32> -> vector<1x84xf32>
    %c0_171 = arith.constant 0 : index
    %c0_172 = arith.constant 0 : index
    %237 = vector.load %arg8[%c0_171, %c0_172] : memref<1x84xf32, #tpu.memory_space<vmem>>, vector<1x84xf32>
    %238 = arith.addf %236, %237 : vector<1x84xf32>
    %239 = math.tanh %238 : vector<1x84xf32>
    %240 = arith.truncf %239 : vector<1x84xf32> to vector<1x84xbf16>
    %c0_173 = arith.constant 0 : index
    %c0_174 = arith.constant 0 : index
    %241 = vector.load %arg9[%c0_173, %c0_174] : memref<84x10xbf16, #tpu.memory_space<vmem>>, vector<84x10xbf16>
    %cst_175 = arith.constant dense<0.000000e+00> : vector<1x10xf32>
    %242 = tpu.matmul %240, %241, %cst_175 {dimension_numbers = #tpu.dot_dimension_numbers<[1], [0], [0], [1], [0, 0, 1, 1], [], []>} : vector<1x84xbf16>, vector<84x10xbf16>, vector<1x10xf32> -> vector<1x10xf32>
    %c0_176 = arith.constant 0 : index
    %c0_177 = arith.constant 0 : index
    %243 = vector.load %arg10[%c0_176, %c0_177] : memref<1x10xf32, #tpu.memory_space<vmem>>, vector<1x10xf32>
    %244 = arith.addf %242, %243 : vector<1x10xf32>
    %c1_178 = arith.constant 1 : index
    %c0_179 = arith.constant 0 : index
    %245 = vector.load %arg15[%c1_178, %c0_179] : memref<2x10xf32, #tpu.memory_space<vmem>>, vector<1x10xf32>
    tpu.vector_store %arg15[%c1_178, %c0_179], %244 {strides = array<i32>} : memref<2x10xf32, #tpu.memory_space<vmem>>, vector<1x10xf32>,
    return
  }
}

</mosaic_0001>

<bundles_post_ra>
// kernel: lenet5_forward.1
= control target key start
LH: loop header
LB: loop body
LE: loop exit
PB: predicated region body
PF: predicated region fallthrough
CT: control target
= control target key end

     0   :  { %v5672_v2 = vmov 0   ;;  %vm111_vm0 = vsmask.f32 7424  ;;  %vm147_vm1 = vcmask 261120   ;;  %vm487_vm2 = vcmask 1045504   ;;  %s7095_s0 = inlined_call_operand.vmem [shape: f32[2,1,32,32], index: 0, kind: input, shape index: {}]   ;;  %s7096_s1 = inlined_call_operand.vmem [shape: bf16[5,32,168], index: 1, kind: input, shape index: {}]   ;;  %s7097_s2 = inlined_call_operand.vmem [shape: f32[1,84], index: 2, kind: input, shape index: {}]   ;;  %s7098_s3 = inlined_call_operand.vmem [shape: bf16[5,84,160], index: 3, kind: input, shape index: {}]   ;;  %s7099_s4 = inlined_call_operand.vmem [shape: f32[1,80], index: 4, kind: input, shape index: {}]   ;;  %s7100_s5 = inlined_call_operand.vmem [shape: bf16[5,80,120], index: 5, kind: input, shape index: {}]   ;;  %s7101_s6 = inlined_call_operand.vmem [shape: f32[1,120], index: 6, kind: input, shape index: {}]   ;;  %s7102_s7 = inlined_call_operand.vmem [shape: bf16[120,84], index: 7, kind: input, shape index: {}]   ;;  %s7103_s8 = inlined_call_operand.vmem [shape: f32[1,84], index: 8, kind: input, shape index: {}]   ;;  %s7104_s9 = inlined_call_operand.vmem [shape: bf16[84,10], index: 9, kind: input, shape index: {}]   ;;  %s7105_s10 = inlined_call_operand.vmem [shape: f32[1,10], index: 10, kind: input, shape index: {}]   ;;  %s7106_s11 = inlined_call_operand.vmem [shape: f32[14,28], index: 11, kind: input, shape index: {}]   ;;  %s7107_s12 = inlined_call_operand.vmem [shape: f32[168,84], index: 12, kind: input, shape index: {}]   ;;  %s7108_s13 = inlined_call_operand.vmem [shape: f32[5,10], index: 13, kind: input, shape index: {}]   ;;  %s7109_s14 = inlined_call_operand.vmem [shape: f32[160,80], index: 14, kind: input, shape index: {}]   ;;  %s7110_s15 = inlined_call_operand.hbm [shape: f32[2,10], index: 15, kind: output, shape index: {}]  }
   0x1   :  { %v5320_v0 = vld [vmem:[%s7096_s1 + $0x24] ss:$8 sps:$4 sm:$0xff]   ;;  %v5322_v1 = vld [vmem:[%s7096_s1 + $0x20] ss:$8 sps:$4 sm:$0xff]   ;;  %186 = vmatprep.mubr.bf16.mxu0 %v5672_v2  ;;  %v5323_v3 = vld [vmem:[%s7096_s1 + $0x34] ss:$8 sps:$4 sm:$0xff]  }
   0x2   :  { %154 = vmatprep.subr.bf16.mxu0 %v5320_v0  ;;  %v5325_v4 = vld [vmem:[%s7096_s1 + $0x30] ss:$8 sps:$4 sm:$0xff]   ;;  %v96_v5 = vld [vmem:[%s7095_s0] sm:$0xff]  ;;  %v97_v6 = vld [vmem:[%s7095_s0 + $0x8] sm:$0xff]  ;;  %vm291_vm3 = vcmask 1046528  }
   0x3   :  { %155 = vmatpush1.bf16.msra.mxu0 %v5322_v1  ;;  %v98_v7 = vld [vmem:[%s7095_s0 + $0x10] sm:$0xff]  ;;  %v99_v8 = vld [vmem:[%s7095_s0 + $0x18] sm:$0xff]  ;;  %v100_v9 = vpack.c.bf16 %v97_v6, %v96_v5  ;;  %v5328_v11 = vld [vmem:[%s7096_s1 + $0x4] ss:$8 sps:$4 sm:$0xff]   ;;  %vm387_vm4 = vsmask.f32 6400 }
   0x4   :  { %156 = vmatprep.subr.bf16.mxu0 %v5323_v3  ;;  %v5783_v10 = vpack.c.bf16 %v99_v8, %v98_v7  ;;  %v5326_v18 = vld [vmem:[%s7096_s1] ss:$8 sps:$4 sm:$0xff]   ;;  %v5331_v20 = vld [vmem:[%s7096_s1 + $0x14] ss:$8 sps:$4 sm:$0xff]   ;;  %v5329_v25 = vld [vmem:[%s7096_s1 + $0x10] ss:$8 sps:$4 sm:$0xff]  }
   0x5   :  { %v113_v12 = vshrl.u32 %v100_v9, 16  ;;  %v115_v13 = vshll.u32 %v100_v9, 16  ;;  %v488_v19 = vrot.slane %v100_v9, 2  ;;  %v5334_v26 = vld [vmem:[%s7096_s1 + $0x44] ss:$8 sps:$4 sm:$0xff]   ;;  %v292_v32 = vrot.slane %v100_v9, 1 }
   0x6   :  { %v120_v14 = vshll.u32 %v5783_v10, 16  ;;  %v489_v21 = vrot.slane %v5783_v10, 2  ;;  %v124_v23 = vshrl.u32 %v5783_v10, 16  ;;  %v5332_v28 = vld [vmem:[%s7096_s1 + $0x40] ss:$8 sps:$4 sm:$0xff]   ;;  %v293_v35 = vrot.slane %v5783_v10, 1 }
   0x7   :  { %157 = vmatpush1.bf16.msra.mxu0 %v5325_v4  ;;  %v117_v15 = vrot.slane %v115_v13, 1  ;;  %v5337_v29 = vld [vmem:[%s7096_s1 + $0x54] ss:$8 sps:$4 sm:$0xff]   ;;  %v5335_v30 = vld [vmem:[%s7096_s1 + $0x50] ss:$8 sps:$4 sm:$0xff]   ;;  %v388_v33 = vrot.slane %v113_v12, 1 }
   0x8   :  { %v122_v16 = vrot.slane %v120_v14, 1  ;;  %231 = vmatprep.subr.bf16.mxu0 %v5328_v11  ;;  %v490_v24 = vsel %vm487_vm2, %v488_v19, %v489_v21  ;;  %v5340_v31 = vld [vmem:[%s7096_s1 + $0x64] ss:$8 sps:$4 sm:$0xff]   ;;  %v389_v34 = vrot.slane %v115_v13, 2  ;;  %v392_v36 = vrot.slane %v120_v14, 2 }
   0x9   :  { %v118_v17 = vor.u32 %v117_v15, %v113_v12  ;;  %v391_v37 = vrot.slane %v124_v23, 1  ;;  %v5338_v38 = vld [vmem:[%s7096_s1 + $0x60] ss:$8 sps:$4 sm:$0xff]   ;;  %v5343_v39 = vld [vmem:[%s7096_s1 + $0x74] ss:$8 sps:$4 sm:$0xff]   ;;  %v294_v40 = vsel %vm291_vm3, %v292_v32, %v293_v35 }
   0xa   :  { %v126_v27 = vor.u32 %v124_v23, %v122_v16  ;;  %v5341_v41 = vld [vmem:[%s7096_s1 + $0x70] ss:$8 sps:$4 sm:$0xff]   ;;  %v5346_v42 = vld [vmem:[%s7096_s1 + $0x84] ss:$8 sps:$4 sm:$0xff]   ;;  %v390_v43 = vor.u32 %v389_v34, %v388_v33  ;;  %v5344_v45 = vld [vmem:[%s7096_s1 + $0x80] ss:$8 sps:$4 sm:$0xff]  }
   0xb   :  { %v123_v22 = vsel %vm111_vm0, %v118_v17, %v122_v16  ;;  %v393_v44 = vor.u32 %v392_v36, %v391_v37  ;;  %v5349_v46 = vld [vmem:[%s7096_s1 + $0x94] ss:$8 sps:$4 sm:$0xff]   ;;  %v5347_v48 = vld [vmem:[%s7096_s1 + $0x90] ss:$8 sps:$4 sm:$0xff]  }
   0xc   :  { %4250 = vmatmul.mubr.msk.bf16.vlgmr.msra.gmra.mrb[0].mxu0 %vm147_vm1, %v123_v22 }
   0xd   :  { %196 = vmatprep.mubr.bf16.mxu0 %v5672_v2  ;;  %232 = vmatpush1.bf16.msra.mxu0 %v5326_v18  ;;  %v394_v47 = vsel %vm387_vm4, %v390_v43, %v393_v44 }
   0xe   :  { %233 = vmatprep.subr.bf16.mxu0 %v5331_v20 }
  0x11   :  { %234 = vmatpush1.bf16.msra.mxu0 %v5329_v25 }
  0x12   :  { %321 = vmatprep.subr.bf16.mxu0 %v5334_v26 }
  0x14   :  { %4251 = vmatmul.mubr.msk.bf16.gmra.mrb[4].mxu0 %vm147_vm1, %v126_v27 }
  0x15   :  { %263 = vmatprep.mubr.bf16.mxu0 %v5672_v2 }
  0x1c   :  { %4256 = vmatmul.mubr.msk.bf16.vlgmr.msra.gmra.mrb[0].mxu0 %vm147_vm1, %v100_v9 }
  0x1d   :  { %273 = vmatprep.mubr.bf16.mxu0 %v5672_v2  ;;  %322 = vmatpush1.bf16.msra.mxu0 %v5332_v28 }
  0x1e   :  { %323 = vmatprep.subr.bf16.mxu0 %v5337_v29 }
  0x21   :  { %324 = vmatpush1.bf16.msra.mxu0 %v5335_v30 }
  0x22   :  { %421 = vmatprep.subr.bf16.mxu0 %v5340_v31 }
  0x24   :  { %4257 = vmatmul.mubr.msk.bf16.gmra.mrb[4].mxu0 %vm147_vm1, %v5783_v10 }
  0x25   :  { %353 = vmatprep.mubr.bf16.mxu0 %v5672_v2 }
  0x2c   :  { %4266 = vmatmul.mubr.msk.bf16.vlgmr.msra.gmra.mrb[0].mxu0 %vm147_vm1, %v294_v40 }
  0x2d   :  { %363 = vmatprep.mubr.bf16.mxu0 %v5672_v2  ;;  %422 = vmatpush1.bf16.msra.mxu0 %v5338_v38 }
  0x2e   :  { %423 = vmatprep.subr.bf16.mxu0 %v5343_v39 }
  0x31   :  { %424 = vmatpush1.bf16.msra.mxu0 %v5341_v41 }
  0x32   :  { %517 = vmatprep.subr.bf16.mxu0 %v5346_v42 }
  0x34   :  { %4267 = vmatmul.mubr.msk.bf16.gmra.mrb[4].mxu0 %vm147_vm1, %v293_v35 }
  0x35   :  { %453 = vmatprep.mubr.bf16.mxu0 %v5672_v2 }
  0x3c   :  { %4276 = vmatmul.mubr.msk.bf16.vlgmr.msra.gmra.mrb[0].mxu0 %vm147_vm1, %v394_v47 }
  0x3d   :  { %463 = vmatprep.mubr.bf16.mxu0 %v5672_v2  ;;  %518 = vmatpush1.bf16.msra.mxu0 %v5344_v45 }
  0x3e   :  { %519 = vmatprep.subr.bf16.mxu0 %v5349_v46 }
  0x41   :  { %520 = vmatpush1.bf16.msra.mxu0 %v5347_v48 }
  0x44   :  { %4277 = vmatmul.mubr.msk.bf16.gmra.mrb[4].mxu0 %vm147_vm1, %v393_v44 }
  0x45   :  { %549 = vmatprep.mubr.bf16.mxu0 %v5672_v2 }
  0x4c   :  { %4286 = vmatmul.mubr.msk.bf16.vlgmr.msra.gmra.mrb[0].mxu0 %vm147_vm1, %v490_v24 }
  0x4d   :  { %559 = vmatprep.mubr.bf16.mxu0 %v5672_v2 }
  0x54   :  { %4287 = vmatmul.mubr.msk.bf16.gmra.mrb[4].mxu0 %vm147_vm1, %v489_v21 }
  0x55   :  { %20 = vsyncpa [#allocation3], 0  ;;  %v5673_v49 = vmov 0.0   ;;  %vm585_vm5 = vcmask 1043456   ;;  %vm5674_vm6 = vmmov 1   ;;  %v54_v63 = vld [vmem:[%s7107_s12] sm:$0xff] }
  0x56   :  { %656 = vmatprep.mubr.f32.mxu1 %v5673_v49  ;;  %1455 = vmatprep.mubr.f32.mxu0 %v5673_v49  ;;  %vm5869_vm7 = vmpackc.low %vm585_vm5, %vm5674_vm6  ;;  %v55_v0 = vld [vmem:[%s7107_s12 + $0x8] sm:$0xff]  ;;  %v52_v1 = vld [vmem:[%s7106_s11] sm:$0xff]  ;;  %vm578_vm8 = vcmask 228352   ;;  %v5675_v4 = vmov 0.0|0.0   ;;  %vm676_vm9 = vcmask 326656   ;;  %vm850_vm10 = vcmask 1041408  }
  0x57   :  { %v5886_v3 = vpack.c.bf16 %v55_v0, %v54_v63  ;;  %v56_v5 = vld [vmem:[%s7107_s12 + $0x10] sm:$0xff]  ;;  %v57_v6 = vld [vmem:[%s7107_s12 + $0x18] sm:$0xff]  ;;  %v53_v7 = vld [vmem:[%s7106_s11 + $0x8] sm:$0x3f]  ;;  %vm846_vm11 = vcmask 687104   ;;  %vm1381_vm13 = vcmask 80896  }
  0x58   :  { %v5901_v8 = vpack.c.bf16 %v57_v6, %v56_v5  ;;  %v58_v9 = vld [vmem:[%s7107_s12 + $0x20] sm:$0xff]  ;;  %v59_v10 = vld [vmem:[%s7107_s12 + $0x28] sm:$0xff]  ;;  %v60_v12 = vld [vmem:[%s7107_s12 + $0x30] sm:$0xff]  ;;  %vm5676_vm14 = vmmov 0   ;;  %vm1598_vm15 = vcmask 654336  }
  0x59   :  { %v5912_v11 = vpack.c.bf16 %v59_v10, %v58_v9  ;;  %v61_v13 = vld [vmem:[%s7107_s12 + $0x38] sm:$0xff]  ;;  %v62_v15 = vld [vmem:[%s7107_s12 + $0x40] sm:$0xff]  ;;  %v63_v16 = vld [vmem:[%s7107_s12 + $0x48] sm:$0xff] }
  0x5a   :  { %v5922_v14 = vpack.c.bf16 %v61_v13, %v60_v12  ;;  %v5932_v17 = vpack.c.bf16 %v63_v16, %v62_v15  ;;  %v64_v18 = vld [vmem:[%s7107_s12 + $0x50] sm:$0xff]  ;;  %v65_v19 = vld [vmem:[%s7107_s12 + $0x58] sm:$0xff]  ;;  %v66_v21 = vld [vmem:[%s7107_s12 + $0x60] sm:$0xff] }
  0x5b   :  { %v5942_v20 = vpack.c.bf16 %v65_v19, %v64_v18  ;;  %v67_v22 = vld [vmem:[%s7107_s12 + $0x68] sm:$0xff]  ;;  %v68_v24 = vld [vmem:[%s7107_s12 + $0x70] sm:$0xff]  ;;  %v69_v25 = vld [vmem:[%s7107_s12 + $0x78] sm:$0xff] }
  0x5c   :  { %v5952_v23 = vpack.c.bf16 %v67_v22, %v66_v21  ;;  %v5962_v26 = vpack.c.bf16 %v69_v25, %v68_v24  ;;  %v70_v27 = vld [vmem:[%s7107_s12 + $0x80] sm:$0xff]  ;;  %v71_v28 = vld [vmem:[%s7107_s12 + $0x88] sm:$0xff]  ;;  %v72_v30 = vld [vmem:[%s7107_s12 + $0x90] sm:$0xff] }
  0x5d   :  { %v5972_v29 = vpack.c.bf16 %v71_v28, %v70_v27  ;;  %v73_v31 = vld [vmem:[%s7107_s12 + $0x98] sm:$0xff]  ;;  %v74_v33 = vld [vmem:[%s7107_s12 + $0xa0] sm:$0xff]  ;;  %v5355_v40 = vld [vmem:[%s7098_s3 + $0x6c] ss:$8 sps:$4 sm:$0xff]  }
  0x5e   :  { %v5982_v32 = vpack.c.bf16 %v73_v31, %v72_v30  ;;  %v5352_v38 = vld [vmem:[%s7098_s3 + $0x5c] ss:$8 sps:$4 sm:$0xff]   ;;  %v5350_v39 = vld [vmem:[%s7098_s3 + $0x58] ss:$8 sps:$4 sm:$0xff]   ;;  %v5353_v41 = vld [vmem:[%s7098_s3 + $0x68] ss:$8 sps:$4 sm:$0xff]  }
  0x5f   :  { %v5358_v42 = vld [vmem:[%s7098_s3 + $0x7c] ss:$8 sps:$4 sm:$0xff]   ;;  %v5356_v43 = vld [vmem:[%s7098_s3 + $0x78] ss:$8 sps:$4 sm:$0xff]   ;;  %v5361_v44 = vld [vmem:[%s7098_s3 + $0x8c] ss:$8 sps:$4 sm:$0xff]  }
  0x60   :  { %v5359_v45 = vld [vmem:[%s7098_s3 + $0x88] ss:$8 sps:$4 sm:$0xff]   ;;  %v5364_v46 = vld [vmem:[%s7098_s3 + $0x9c] ss:$8 sps:$4 sm:$0xff]   ;;  %v5362_v47 = vld [vmem:[%s7098_s3 + $0x98] ss:$8 sps:$4 sm:$0xff]  }
  0x61   :  { %v4305_v48 = vld [vmem:[%s7098_s3 + $0xa8] sm:$0x33]  ;;  %v5372_v13 = vld [vmem:[%s7098_s3 + $0x14] ss:$8 sps:$4 sm:$0xff]   ;;  %v5370_v16 = vld [vmem:[%s7098_s3 + $0x10] ss:$8 sps:$4 sm:$0xff]  }
  0x62   :  { %v5367_v10 = vld [vmem:[%s7098_s3] ss:$8 sps:$4 sm:$0xff]   ;;  %v5375_v18 = vld [vmem:[%s7098_s3 + $0x24] ss:$8 sps:$4 sm:$0xff]   ;;  %v5378_v21 = vld [vmem:[%s7098_s3 + $0x34] ss:$8 sps:$4 sm:$0xff]  }
  0x63   :  { %v5373_v19 = vld [vmem:[%s7098_s3 + $0x20] ss:$8 sps:$4 sm:$0xff]   ;;  %v5376_v22 = vld [vmem:[%s7098_s3 + $0x30] ss:$8 sps:$4 sm:$0xff]   ;;  %v5381_v24 = vld [vmem:[%s7098_s3 + $0x44] ss:$8 sps:$4 sm:$0xff]  }
  0x64   :  { %v771_v25 = vld [vmem:[%s7098_s3 + $0x50] sm:$0x33]  ;;  %v5379_v27 = vld [vmem:[%s7098_s3 + $0x40] ss:$8 sps:$4 sm:$0xff]   ;;  %vm6199_vm12 = vmpackc.low %vm850_vm10, %vm5674_vm6  ;;  %vm2037_vm6 = vcmask 982016  }
  0x65   :  { %v4331_v28 = vcombine.high %v771_v25, %v771_v25  ;;  %v4330_v30 = vcombine.low %v771_v25, %v771_v25  ;;  %v5646_v61 = vld [vmem:[%s7107_s12 + $0xa0] sm:$0xff] }
  0x67   :  { %v958_v31 = vsel %vm850_vm10, %v4330_v30, 0 }
 0x11f   :  { %v551_v50 = vpop.f32.mrb[0].mxu0 }
 0x120   :  { %v553_v51 = vpop.f32.mrb[1].mxu0 }
 0x121   :  { %v555_v52 = vpop.f32.mrb[2].mxu0 }
 0x122   :  { %v5068_v53 = vpack.c.bf16 %v555_v52, %v551_v50  ;;  %v557_v54 = vpop.f32.mrb[3].mxu0  ;;  %v4317_v50 = vcombine.high %v4305_v48, %v4305_v48  ;;  %v5369_v52 = vld [vmem:[%s7098_s3 + $0x4] ss:$8 sps:$4 sm:$0xff]  }
 0x123   :  { %v5066_v55 = vpack.c.bf16 %v557_v54, %v553_v51  ;;  %v4316_v51 = vcombine.low %v4305_v48, %v4305_v48  ;;  %v4292_v54 = vld [vmem:[%s7097_s2] ss:$0 sm:$0xff]  ;;  %v5401_v48 = vld [vmem:[%s7098_s3 + $0x108] ss:$8 sps:$4 sm:$0xff]  }
 0x125   :  { %5067 = vmatprep.subr.bf16.mxu1 %v5066_v55 }
 0x126   :  { %5069 = vmatpush1.bf16.msra.mxu1 %v5068_v53  ;;  %v852_v53 = vsel %vm850_vm10, %v4316_v51, 0  ;;  %v5406_v51 = vld [vmem:[%s7098_s3 + $0x11c] ss:$8 sps:$4 sm:$0xff]  }
 0x127   :  { %v561_v56 = vpop.f32.mrb[4].mxu0 }
 0x128   :  { %v563_v57 = vpop.f32.mrb[5].mxu0 }
 0x129   :  { %v565_v58 = vpop.f32.mrb[6].mxu0 }
 0x12a   :  { %v5073_v59 = vpack.c.bf16 %v565_v58, %v561_v56  ;;  %v567_v60 = vpop.f32.mrb[7].mxu0 }
 0x12b   :  { %v5070_v62 = vpack.c.bf16 %v567_v60, %v563_v57 }
 0x12d   :  { %5072 = vmatprep.subr.msk.bf16.mxu1 %vm5869_vm7, %v5070_v62 }
 0x12e   :  { %5075 = vmatpush1.bf16.msk.msra.mxu1 %vm5869_vm7, %v5073_v59 }
 0x12f   :  { %5076 = vmatprep.subr.bf16.mxu1 %v5675_v4 }
 0x131   :  { %4290 = vmatmul.mubr.msk.f32.vlgmr.msra.gmra.mrb[0].mxu1 %vm578_vm8, %v52_v1 }
 0x132   :  { %662 = vmatprep.mubr.f32.mxu1 %v5673_v49  ;;  %5078 = vmatpush1.bf16.msra.mxu1 %v5886_v3 }
 0x133   :  { %5079 = vmatprep.subr.bf16.mxu1 %v5675_v4 }
 0x135   :  { %4291 = vmatmul.mubr.msk.f32.gmra.mrb[2].mxu1 %vm578_vm8, %v53_v7 }
 0x136   :  { %5081 = vmatpush1.bf16.msra.mxu1 %v5901_v8 }
 0x137   :  { %5082 = vmatprep.subr.bf16.mxu1 %v5675_v4 }
 0x13a   :  { %5084 = vmatpush1.bf16.msra.mxu1 %v5912_v11 }
 0x13b   :  { %5085 = vmatprep.subr.bf16.mxu1 %v5675_v4 }
 0x13e   :  { %5087 = vmatpush1.bf16.msra.mxu1 %v5922_v14 }
 0x13f   :  { %5088 = vmatprep.subr.bf16.mxu1 %v5675_v4 }
 0x142   :  { %5090 = vmatpush1.bf16.msra.mxu1 %v5932_v17 }
 0x143   :  { %5091 = vmatprep.subr.bf16.mxu1 %v5675_v4 }
 0x146   :  { %5093 = vmatpush1.bf16.msra.mxu1 %v5942_v20 }
 0x147   :  { %5094 = vmatprep.subr.bf16.mxu1 %v5675_v4 }
 0x14a   :  { %5096 = vmatpush1.bf16.msra.mxu1 %v5952_v23 }
 0x14b   :  { %5097 = vmatprep.subr.bf16.mxu1 %v5675_v4 }
 0x14e   :  { %5099 = vmatpush1.bf16.msra.mxu1 %v5962_v26 }
 0x14f   :  { %5100 = vmatprep.subr.bf16.mxu1 %v5675_v4 }
 0x152   :  { %5102 = vmatpush1.bf16.msra.mxu1 %v5972_v29 }
 0x153   :  { %5103 = vmatprep.subr.bf16.mxu1 %v5675_v4 }
 0x156   :  { %5105 = vmatpush1.bf16.msra.mxu1 %v5982_v32 }
 0x157   :  { %723 = vmatprep.subr.mxu1 %v5673_v49 }
 0x15a   :  { %724 = vmatpush1.msra.mxu1 %v74_v33  ;;  %v5386_v33 = vld [vmem:[%s7098_s3 + $0xb4] ss:$8 sps:$4 sm:$0xff]  }
 0x15b   :  { %857 = vmatprep.subr.bf16.mxu1 %v5352_v38  ;;  %v5390_v38 = vld [vmem:[%s7098_s3 + $0xd0] ss:$8 sps:$4 sm:$0xff]  }
 0x204   :  { %v658_v34 = vpop.f32.mrb[0].mxu1 }
 0x205   :  { %v660_v35 = vpop.f32.mrb[1].mxu1 }
 0x206   :  { %4293 = vmatprep.mubr.msk.f32.mxu1 %vm676_vm9, %v660_v35  ;;  %v5389_v35 = vld [vmem:[%s7098_s3 + $0xc4] ss:$8 sps:$4 sm:$0xff]  }
 0x207   :  { %748 = vmatmul.mubr.f32.vlgmr.msra.gmra.mrb[4].mxu1 %v658_v34  ;;  %v5384_v34 = vld [vmem:[%s7098_s3 + $0xb0] ss:$8 sps:$4 sm:$0xff]  }
 0x208   :  { %v664_v36 = vpop.f32.mrb[2].mxu1  ;;  %858 = vmatpush1.bf16.msra.mxu1 %v5350_v39  ;;  %v5395_v39 = vld [vmem:[%s7098_s3 + $0xe4] ss:$8 sps:$4 sm:$0xff]  }
 0x209   :  { %v666_v37 = vpop.f32.mrb[3].mxu1  ;;  %859 = vmatprep.subr.bf16.mxu1 %v5355_v40  ;;  %v5393_v40 = vld [vmem:[%s7098_s3 + $0xe0] ss:$8 sps:$4 sm:$0xff]  }
 0x20a   :  { %4294 = vmatprep.mubr.msk.f32.mxu1 %vm676_vm9, %v666_v37  ;;  %v5392_v37 = vld [vmem:[%s7098_s3 + $0xd4] ss:$8 sps:$4 sm:$0xff]  }
 0x20b   :  { %753 = vmatmul.mubr.f32.gmra.mrb[6].mxu1 %v664_v36  ;;  %v5387_v36 = vld [vmem:[%s7098_s3 + $0xc0] ss:$8 sps:$4 sm:$0xff]  }
 0x20c   :  { %889 = vmatprep.mubr.bf16.mxu1 %v5672_v2  ;;  %860 = vmatpush1.bf16.msra.mxu1 %v5353_v41  ;;  %v5398_v41 = vld [vmem:[%s7098_s3 + $0xf4] ss:$8 sps:$4 sm:$0xff]  }
 0x20d   :  { %861 = vmatprep.subr.bf16.mxu1 %v5358_v42  ;;  %v4344_v42 = vld [vmem:[%s7098_s3 + $0x100] sm:$0x33] }
 0x210   :  { %862 = vmatpush1.bf16.msra.mxu1 %v5356_v43  ;;  %v5396_v43 = vld [vmem:[%s7098_s3 + $0xf0] ss:$8 sps:$4 sm:$0xff]  }
 0x211   :  { %863 = vmatprep.subr.bf16.mxu1 %v5361_v44  ;;  %v4356_v44 = vcombine.high %v4344_v42, %v4344_v42 }
 0x214   :  { %864 = vmatpush1.bf16.msra.mxu1 %v5359_v45  ;;  %v4355_v45 = vcombine.low %v4344_v42, %v4344_v42  ;;  %v81_v42 = vld [vmem:[%s7109_s14 + $0x28] sm:$0xff] }
 0x215   :  { %865 = vmatprep.subr.bf16.mxu1 %v5364_v46 }
 0x216   :  { %v1079_v46 = vsel %vm850_vm10, %v4355_v45, 0  ;;  %v83_v45 = vld [vmem:[%s7109_s14 + $0x38] sm:$0xff] }
 0x218   :  { %866 = vmatpush1.bf16.msra.mxu1 %v5362_v47  ;;  %v5403_v47 = vld [vmem:[%s7098_s3 + $0x10c] ss:$8 sps:$4 sm:$0xff]  }
 0x219   :  { %4318 = vmatprep.subr.msk.bf16.mxu1 %vm850_vm10, %v4317_v50 }
 0x21c   :  { %868 = vmatpush1.bf16.msra.mxu1 %v852_v53  ;;  %v5409_v53 = vld [vmem:[%s7098_s3 + $0x12c] ss:$8 sps:$4 sm:$0xff]  }
 0x21d   :  { %963 = vmatprep.subr.bf16.mxu1 %v5369_v52  ;;  %v5404_v52 = vld [vmem:[%s7098_s3 + $0x118] ss:$8 sps:$4 sm:$0xff]  }
 0x2da   :  { %v749_v55 = vpop.f32.mrb[4].mxu1 }
 0x2db   :  { %v751_v56 = vpop.f32.mrb[5].mxu1  ;;  %v750_v57 = vadd.f32 %v4292_v54, %v749_v55  ;;  %v5412_v55 = vld [vmem:[%s7098_s3 + $0x13c] ss:$8 sps:$4 sm:$0xff]  }
 0x2dc   :  { %v5410_v56 = vld [vmem:[%s7098_s3 + $0x138] ss:$8 sps:$4 sm:$0xff]  }
 0x2dd   :  { %5628 = vtanh.f32 %v750_v57  ;;  %v5415_v57 = vld [vmem:[%s7098_s3 + $0x14c] ss:$8 sps:$4 sm:$0xff]  }
 0x2de   :  { %v754_v58 = vpop.f32.mrb[6].mxu1 }
 0x2df   :  { %v755_v59 = vadd.f32 %v4292_v54, %v754_v58  ;;  %v756_v60 = vpop.f32.mrb[7].mxu1  ;;  %v5407_v54 = vld [vmem:[%s7098_s3 + $0x128] ss:$8 sps:$4 sm:$0xff]   ;;  %v4369_v58 = vld [vmem:[%s7098_s3 + $0x158] sm:$0x33] }
 0x2e0   :  { %v4381_v60 = vcombine.high %v4369_v58, %v4369_v58 }
 0x2e1   :  { %5630 = vtanh.f32 %v755_v59  ;;  %v5413_v59 = vld [vmem:[%s7098_s3 + $0x148] ss:$8 sps:$4 sm:$0xff]  }
 0x2e7   :  { %v5629_v62 = vpop.eup %5628 }
 0x2eb   :  { %v5631_v63 = vpop.eup %5630 }
 0x2ec   :  { %v6034_v0 = vpack.c.bf16 %v5631_v63, %v5629_v62  ;;  %v4380_v62 = vcombine.low %v4369_v58, %v4369_v58  ;;  %v91_v58 = vld [vmem:[%s7109_s14 + $0x78] sm:$0xff] }
 0x2ee   :  { %v785_v1 = vshrl.u32 %v6034_v0, 16  ;;  %v787_v5 = vshll.u32 %v6034_v0, 16  ;;  %v1019_v50 = vrot.slane %v6034_v0, 1  ;;  %v1205_v63 = vsel %vm850_vm10, %v4380_v62, 0  ;;  %v93_v62 = vld [vmem:[%s7109_s14 + $0x88] sm:$0xff] }
 0x2f0   :  { %v789_v6 = vrot.slane %v787_v5, 1  ;;  %v6038_v7 = vrot.slane %v785_v1, 1  ;;  %v6040_v9 = vrot.slane %v787_v5, 2  ;;  %v5418_v5 = vld [vmem:[%s7098_s3 + $0x160] ss:$8 sps:$4 sm:$0xff]  }
 0x2f2   :  { %v790_v12 = vor.u32 %v789_v6, %v785_v1  ;;  %v1145_v15 = vor.u32 %v6040_v9, %v6038_v7  ;;  %v5420_v1 = vld [vmem:[%s7098_s3 + $0x164] ss:$8 sps:$4 sm:$0xff]   ;;  %v5423_v6 = vld [vmem:[%s7098_s3 + $0x174] ss:$8 sps:$4 sm:$0xff]   ;;  %v5427_v9 = vld [vmem:[%s7098_s3 + $0x190] ss:$8 sps:$4 sm:$0xff]  }
 0x2f3   :  { %v5429_v7 = vld [vmem:[%s7098_s3 + $0x194] ss:$8 sps:$4 sm:$0xff]  }
 0x2f4   :  { %4319 = vmatmul.mubr.msk.bf16.vlgmr.msra.gmra.mrb[8].mxu1 %vm846_vm11, %v790_v12  ;;  %v5426_v12 = vld [vmem:[%s7098_s3 + $0x184] ss:$8 sps:$4 sm:$0xff]  }
 0x2f5   :  { %964 = vmatpush1.bf16.msra.mxu1 %v5367_v10  ;;  %995 = vmatprep.mubr.bf16.mxu1 %v5672_v2  ;;  %v5421_v10 = vld [vmem:[%s7098_s3 + $0x170] ss:$8 sps:$4 sm:$0xff]  }
 0x2f6   :  { %965 = vmatprep.subr.bf16.mxu1 %v5372_v13  ;;  %v5424_v13 = vld [vmem:[%s7098_s3 + $0x180] ss:$8 sps:$4 sm:$0xff]  }
 0x2f9   :  { %966 = vmatpush1.bf16.msra.mxu1 %v5370_v16  ;;  %v4394_v16 = vld [vmem:[%s7098_s3 + $0x1b0] sm:$0x33] }
 0x2fa   :  { %967 = vmatprep.subr.bf16.mxu1 %v5375_v18  ;;  %v5430_v18 = vld [vmem:[%s7098_s3 + $0x1a0] ss:$8 sps:$4 sm:$0xff]  }
 0x2fd   :  { %968 = vmatpush1.bf16.msra.mxu1 %v5373_v19  ;;  %v4406_v19 = vcombine.high %v4394_v16, %v4394_v16 }
 0x2fe   :  { %969 = vmatprep.subr.bf16.mxu1 %v5378_v21  ;;  %v4405_v21 = vcombine.low %v4394_v16, %v4394_v16  ;;  %v5439_v16 = vld [vmem:[%s7100_s5 + $0x38] sm:$0xff]  }
 0x301   :  { %970 = vmatpush1.bf16.msra.mxu1 %v5376_v22  ;;  %v1329_v22 = vsel %vm850_vm10, %v4405_v21, 0  ;;  %v5442_v21 = vld [vmem:[%s7100_s5 + $0x90] sm:$0xff]  }
 0x302   :  { %971 = vmatprep.subr.bf16.mxu1 %v5381_v24  ;;  %v1269_v24 = vrot.slane %v6034_v0, 2 }
 0x305   :  { %972 = vmatpush1.bf16.msra.mxu1 %v5379_v27 }
 0x306   :  { %4332 = vmatprep.subr.msk.bf16.mxu1 %vm850_vm10, %v4331_v28 }
 0x309   :  { %974 = vmatpush1.bf16.msra.mxu1 %v958_v31 }
 0x30a   :  { %1084 = vmatprep.subr.bf16.mxu1 %v5386_v33 }
 0x30c   :  { %4333 = vmatmul.mubr.msk.bf16.vlgmr.msra.gmra.mrb[8].mxu1 %vm846_vm11, %v6034_v0  ;;  %v76_v0 = vld [vmem:[%s7109_s14] sm:$0xff] }
 0x30d   :  { %1085 = vmatpush1.bf16.msra.mxu1 %v5384_v34  ;;  %1116 = vmatprep.mubr.bf16.mxu1 %v5672_v2 }
 0x30e   :  { %1086 = vmatprep.subr.bf16.mxu1 %v5389_v35  ;;  %v77_v35 = vld [vmem:[%s7109_s14 + $0x8] sm:$0xff] }
 0x311   :  { %1087 = vmatpush1.bf16.msra.mxu1 %v5387_v36  ;;  %v75_v36 = vld [vmem:[%s7108_s13] sm:$0x1f] }
 0x312   :  { %1088 = vmatprep.subr.bf16.mxu1 %v5392_v37  ;;  %v6216_v37 = vpack.c.bf16 %v77_v35, %v76_v0  ;;  %v5445_v0 = vld [vmem:[%s7100_s5] sm:$0xff]  }
 0x315   :  { %1089 = vmatpush1.bf16.msra.mxu1 %v5390_v38  ;;  %v78_v38 = vld [vmem:[%s7109_s14 + $0x10] sm:$0xff] }
 0x316   :  { %1090 = vmatprep.subr.bf16.mxu1 %v5395_v39  ;;  %v79_v39 = vld [vmem:[%s7109_s14 + $0x18] sm:$0xff] }
 0x319   :  { %1091 = vmatpush1.bf16.msra.mxu1 %v5393_v40  ;;  %v6227_v40 = vpack.c.bf16 %v79_v39, %v78_v38  ;;  %v5446_v38 = vld [vmem:[%s7100_s5 + $0x8] sm:$0xff]   ;;  %v5447_v39 = vld [vmem:[%s7100_s5 + $0x10] sm:$0xff]  }
 0x31a   :  { %1092 = vmatprep.subr.bf16.mxu1 %v5398_v41  ;;  %v80_v41 = vld [vmem:[%s7109_s14 + $0x20] sm:$0xff] }
 0x31d   :  { %1093 = vmatpush1.bf16.msra.mxu1 %v5396_v43  ;;  %v6237_v43 = vpack.c.bf16 %v81_v42, %v80_v41  ;;  %v5448_v41 = vld [vmem:[%s7100_s5 + $0x18] sm:$0xff]   ;;  %v5449_v42 = vld [vmem:[%s7100_s5 + $0x20] sm:$0xff]  }
 0x31e   :  { %4357 = vmatprep.subr.msk.bf16.mxu1 %vm850_vm10, %v4356_v44  ;;  %v82_v44 = vld [vmem:[%s7109_s14 + $0x30] sm:$0xff] }
 0x321   :  { %1095 = vmatpush1.bf16.msra.mxu1 %v1079_v46  ;;  %v6247_v46 = vpack.c.bf16 %v83_v45, %v82_v44  ;;  %v5450_v44 = vld [vmem:[%s7100_s5 + $0x50] sm:$0xff]   ;;  %v5451_v45 = vld [vmem:[%s7100_s5 + $0x58] sm:$0xff]  }
 0x322   :  { %1210 = vmatprep.subr.bf16.mxu1 %v5403_v47  ;;  %v84_v47 = vld [vmem:[%s7109_s14 + $0x40] sm:$0xff] }
 0x324   :  { %4358 = vmatmul.mubr.msk.bf16.vlgmr.msra.gmra.mrb[8].mxu1 %vm846_vm11, %v1019_v50 }
 0x325   :  { %1211 = vmatpush1.bf16.msra.mxu1 %v5401_v48  ;;  %1242 = vmatprep.mubr.bf16.mxu1 %v5672_v2  ;;  %v85_v48 = vld [vmem:[%s7109_s14 + $0x48] sm:$0xff] }
 0x326   :  { %1212 = vmatprep.subr.bf16.mxu1 %v5406_v51  ;;  %v6257_v50 = vpack.c.bf16 %v85_v48, %v84_v47  ;;  %v86_v51 = vld [vmem:[%s7109_s14 + $0x50] sm:$0xff]  ;;  %v5452_v47 = vld [vmem:[%s7100_s5 + $0x60] sm:$0xff]   ;;  %v5453_v48 = vld [vmem:[%s7100_s5 + $0x68] sm:$0xff]  }
 0x329   :  { %1213 = vmatpush1.bf16.msra.mxu1 %v5404_v52  ;;  %v87_v52 = vld [vmem:[%s7109_s14 + $0x58] sm:$0xff] }
 0x32a   :  { %1214 = vmatprep.subr.bf16.mxu1 %v5409_v53  ;;  %v6267_v53 = vpack.c.bf16 %v87_v52, %v86_v51  ;;  %v5454_v51 = vld [vmem:[%s7100_s5 + $0x70] sm:$0xff]   ;;  %v5455_v52 = vld [vmem:[%s7100_s5 + $0xa0] sm:$0xff]  }
 0x32d   :  { %1215 = vmatpush1.bf16.msra.mxu1 %v5407_v54  ;;  %v88_v54 = vld [vmem:[%s7109_s14 + $0x60] sm:$0xff] }
 0x32e   :  { %1216 = vmatprep.subr.bf16.mxu1 %v5412_v55  ;;  %v89_v55 = vld [vmem:[%s7109_s14 + $0x68] sm:$0xff] }
 0x331   :  { %1217 = vmatpush1.bf16.msra.mxu1 %v5410_v56  ;;  %v6277_v56 = vpack.c.bf16 %v89_v55, %v88_v54  ;;  %v5456_v55 = vld [vmem:[%s7100_s5 + $0xa8] sm:$0xff]  }
 0x332   :  { %1218 = vmatprep.subr.bf16.mxu1 %v5415_v57  ;;  %v90_v57 = vld [vmem:[%s7109_s14 + $0x70] sm:$0xff] }
 0x335   :  { %1219 = vmatpush1.bf16.msra.mxu1 %v5413_v59  ;;  %v6287_v59 = vpack.c.bf16 %v91_v58, %v90_v57  ;;  %v5457_v57 = vld [vmem:[%s7100_s5 + $0xb0] sm:$0xff]   ;;  %v5458_v58 = vld [vmem:[%s7100_s5 + $0xb8] sm:$0xff]  }
 0x336   :  { %4382 = vmatprep.subr.msk.bf16.mxu1 %vm850_vm10, %v4381_v60  ;;  %v92_v60 = vld [vmem:[%s7109_s14 + $0x80] sm:$0xff] }
 0x339   :  { %1221 = vmatpush1.bf16.msra.mxu1 %v1205_v63  ;;  %v6297_v63 = vpack.c.bf16 %v93_v62, %v92_v60  ;;  %v5459_v60 = vld [vmem:[%s7100_s5 + $0xc0] sm:$0xff]  }
 0x33a   :  { %1334 = vmatprep.subr.bf16.mxu1 %v5420_v1  ;;  %v94_v1 = vld [vmem:[%s7109_s14 + $0x90] sm:$0xff] }
 0x33c   :  { %4383 = vmatmul.mubr.msk.bf16.vlgmr.msra.gmra.mrb[8].mxu1 %vm846_vm11, %v1145_v15  ;;  %v5432_v15 = vld [vmem:[%s7098_s3 + $0x1a4] ss:$8 sps:$4 sm:$0xff]  }
 0x33d   :  { %1335 = vmatpush1.bf16.msra.mxu1 %v5418_v5  ;;  %1366 = vmatprep.mubr.bf16.mxu1 %v5672_v2  ;;  %v95_v5 = vld [vmem:[%s7109_s14 + $0x98] sm:$0xff] }
 0x33e   :  { %1336 = vmatprep.subr.bf16.mxu1 %v5423_v6  ;;  %v6308_v6 = vpack.c.bf16 %v95_v5, %v94_v1  ;;  %v5460_v1 = vld [vmem:[%s7102_s7] sm:$0xff]   ;;  %v5461_v5 = vld [vmem:[%s7102_s7 + $0x8] sm:$0xff]  }
 0x341   :  { %1337 = vmatpush1.bf16.msra.mxu1 %v5421_v10 }
 0x342   :  { %1338 = vmatprep.subr.bf16.mxu1 %v5426_v12  ;;  %v5435_v12 = vld [vmem:[%s7100_s5 + $0x28] sm:$0xff]  }
 0x345   :  { %1339 = vmatpush1.bf16.msra.mxu1 %v5424_v13 }
 0x346   :  { %1340 = vmatprep.subr.bf16.mxu1 %v5429_v7  ;;  %v5436_v7 = vld [vmem:[%s7100_s5 + $0x78] sm:$0xff]  }
 0x349   :  { %1341 = vmatpush1.bf16.msra.mxu1 %v5427_v9  ;;  %v5437_v9 = vld [vmem:[%s7100_s5 + $0x30] sm:$0xff]  }
 0x34a   :  { %1342 = vmatprep.subr.bf16.mxu1 %v5432_v15  ;;  %v5438_v15 = vld [vmem:[%s7100_s5 + $0x80] sm:$0xff]  }
 0x34d   :  { %1343 = vmatpush1.bf16.msra.mxu1 %v5430_v18  ;;  %v5440_v18 = vld [vmem:[%s7100_s5 + $0x88] sm:$0xff]  }
 0x34e   :  { %4407 = vmatprep.subr.msk.bf16.mxu1 %vm850_vm10, %v4406_v19  ;;  %v5441_v19 = vld [vmem:[%s7100_s5 + $0x40] sm:$0xff]  }
 0x351   :  { %1345 = vmatpush1.bf16.msra.mxu1 %v1329_v22  ;;  %v5443_v22 = vld [vmem:[%s7100_s5 + $0x48] sm:$0xff]  }
 0x352   :  { %4896 = vmatprep.subr.bf16.mxu1 %v5673_v49 }
 0x354   :  { %4408 = vmatmul.mubr.msk.bf16.vlgmr.msra.gmra.mrb[8].mxu1 %vm846_vm11, %v1269_v24  ;;  %v5444_v24 = vld [vmem:[%s7100_s5 + $0x98] sm:$0xff]  }
 0x355   :  { %4897 = vmatpush3.bf16.msra.mxu1 %v5436_v7  ;;  %4906 = vmatprep.mubr.msk.bf16.mxu1 %vm5676_vm14, %v5673_v49  ;;  %v5465_v7 = vld [vmem:[%s7102_s7 + $0x28] sm:$0xff]  }
 0x356   :  { %4898 = vmatprep.subr.bf16.mxu1 %v5673_v49 }
 0x359   :  { %4899 = vmatpush3.bf16.msra.mxu1 %v5438_v15  ;;  %v5467_v15 = vld [vmem:[%s7102_s7 + $0x38] ss:$0 sps:$4 sm:$0xff]  }
 0x35a   :  { %4900 = vmatprep.subr.bf16.mxu1 %v5673_v49 }
 0x35d   :  { %4901 = vmatpush3.bf16.msra.mxu1 %v5440_v18  ;;  %v5470_v18 = vld [vmem:[%s7096_s1 + $0x24] ss:$8 sps:$4 sm:$0xff]  }
 0x35e   :  { %4902 = vmatprep.subr.bf16.mxu1 %v5673_v49 }
 0x361   :  { %4903 = vmatpush3.bf16.msra.mxu1 %v5442_v21 }
 0x362   :  { %4904 = vmatprep.subr.bf16.mxu1 %v5673_v49 }
 0x365   :  { %4905 = vmatpush3.bf16.msra.mxu1 %v5444_v24 }
 0x366   :  { %4924 = vmatprep.subr.bf16.mxu1 %v5673_v49 }
 0x427   :  { %v1368_v25 = vpop.f32.mrb[8].mxu1 }
 0x428   :  { %v1370_v27 = vpop.f32.mrb[9].mxu1 }
 0x429   :  { %v1372_v28 = vpop.f32.mrb[10].mxu1 }
 0x42a   :  { %v5109_v30 = vpack.c.bf16 %v1372_v28, %v1368_v25  ;;  %v1374_v31 = vpop.f32.mrb[11].mxu1  ;;  %v4412_v25 = vld [vmem:[%s7099_s4] ss:$0 sm:$0xff] }
 0x42b   :  { %v5106_v34 = vpack.c.bf16 %v1374_v31, %v1370_v27 }
 0x42d   :  { %5108 = vmatprep.subr.msk.bf16.mxu0 %vm6199_vm12, %v5106_v34 }
 0x42e   :  { %5111 = vmatpush1.bf16.msk.msra.mxu0 %vm6199_vm12, %v5109_v30 }
 0x42f   :  { %5112 = vmatprep.subr.bf16.mxu0 %v5675_v4 }
 0x431   :  { %4411 = vmatmul.mubr.msk.f32.vlgmr.msra.gmra.mrb[8].mxu0 %vm1381_vm13, %v75_v36 }
 0x432   :  { %5114 = vmatpush1.bf16.msra.mxu0 %v6216_v37 }
 0x433   :  { %5115 = vmatprep.subr.bf16.mxu0 %v5675_v4 }
 0x436   :  { %5117 = vmatpush1.bf16.msra.mxu0 %v6227_v40 }
 0x437   :  { %5118 = vmatprep.subr.bf16.mxu0 %v5675_v4 }
 0x43a   :  { %5120 = vmatpush1.bf16.msra.mxu0 %v6237_v43 }
 0x43b   :  { %5121 = vmatprep.subr.bf16.mxu0 %v5675_v4 }
 0x43e   :  { %5123 = vmatpush1.bf16.msra.mxu0 %v6247_v46 }
 0x43f   :  { %5124 = vmatprep.subr.bf16.mxu0 %v5675_v4 }
 0x442   :  { %5126 = vmatpush1.bf16.msra.mxu0 %v6257_v50 }
 0x443   :  { %5127 = vmatprep.subr.bf16.mxu0 %v5675_v4 }
 0x446   :  { %5129 = vmatpush1.bf16.msra.mxu0 %v6267_v53 }
 0x447   :  { %5130 = vmatprep.subr.bf16.mxu0 %v5675_v4 }
 0x44a   :  { %5132 = vmatpush1.bf16.msra.mxu0 %v6277_v56 }
 0x44b   :  { %5133 = vmatprep.subr.bf16.mxu0 %v5675_v4 }
 0x44e   :  { %5135 = vmatpush1.bf16.msra.mxu0 %v6287_v59 }
 0x44f   :  { %5136 = vmatprep.subr.bf16.mxu0 %v5675_v4 }
 0x452   :  { %5138 = vmatpush1.bf16.msra.mxu0 %v6297_v63 }
 0x453   :  { %5139 = vmatprep.subr.bf16.mxu0 %v5675_v4 }
 0x456   :  { %5141 = vmatpush1.bf16.msra.mxu0 %v6308_v6 }
 0x457   :  { %4854 = vmatprep.subr.bf16.mxu0 %v5673_v49 }
 0x504   :  { %v1457_v10 = vpop.f32.mrb[8].mxu0 }
 0x505   :  { %v1459_v13 = vpop.f32.mrb[9].mxu0 }
 0x506   :  { %4413 = vmatprep.mubr.msk.f32.mxu0 %vm147_vm1, %v1459_v13  ;;  %v5464_v13 = vld [vmem:[%s7102_s7 + $0x20] sm:$0xff]  }
 0x507   :  { %1537 = vmatmul.mubr.f32.vlgmr.msra.gmra.mrb[10].mxu0 %v1457_v10  ;;  %v5462_v10 = vld [vmem:[%s7102_s7 + $0x10] sm:$0xff]  }
 0x508   :  { %4855 = vmatpush3.bf16.msra.mxu0 %v5435_v12  ;;  %4864 = vmatprep.mubr.msk.bf16.mxu0 %vm5676_vm14, %v5673_v49  ;;  %v5463_v12 = vld [vmem:[%s7102_s7 + $0x18] sm:$0xff]  }
 0x509   :  { %4856 = vmatprep.subr.bf16.mxu0 %v5673_v49 }
 0x50c   :  { %4857 = vmatpush3.bf16.msra.mxu0 %v5437_v9  ;;  %v5466_v9 = vld [vmem:[%s7102_s7 + $0x30] sm:$0xff]  }
 0x50d   :  { %4858 = vmatprep.subr.bf16.mxu0 %v5673_v49 }
 0x510   :  { %4859 = vmatpush3.bf16.msra.mxu0 %v5439_v16  ;;  %v2042_v16 = vsel %vm585_vm5, %v5467_v15, 0 }
 0x511   :  { %4860 = vmatprep.subr.bf16.mxu0 %v5673_v49 }
 0x514   :  { %4861 = vmatpush3.bf16.msra.mxu0 %v5441_v19 }
 0x515   :  { %4862 = vmatprep.subr.bf16.mxu0 %v5673_v49 }
 0x518   :  { %4863 = vmatpush3.bf16.msra.mxu0 %v5443_v22 }
 0x519   :  { %4868 = vmatprep.subr.bf16.mxu0 %v5673_v49 }
 0x5da   :  { %v1538_v27 = vpop.f32.mrb[10].mxu0 }
 0x5db   :  { %v1539_v28 = vadd.f32 %v4412_v25, %v1538_v27  ;;  %v1540_v30 = vpop.f32.mrb[11].mxu0 }
 0x5dd   :  { %5632 = vtanh.f32 %v1539_v28 }
 0x5e7   :  { %v5633_v31 = vpop.eup %5632 }
 0x5e8   :  { %v1543_v34 = vpack.c.bf16 %v5633_v31, %v5633_v31  ;;  %v5498_v31 = vld [vmem:[%s7104_s9] sm:$0xff]  }
 0x5ea   :  { %v1566_v35 = vshrl.u32 %v1543_v34, 16  ;;  %v1726_v54 = vrot.slane %v1543_v34, 1  ;;  %v1898_v62 = vrot.slane %v1543_v34, 2 }
 0x5ec   :  { %4865 = vmatmul.mubr.msk.bf16.vlgmr.msra.gmra.mrb[12].mxu0 %vm1598_vm15, %v1566_v35  ;;  %v1812_v36 = vrot.slane %v1566_v35, 1 }
 0x5ed   :  { %4869 = vmatpush3.bf16.msra.mxu0 %v5445_v0  ;;  %4878 = vmatprep.mubr.msk.bf16.mxu0 %vm5676_vm14, %v5673_v49 }
 0x5ee   :  { %4907 = vmatmul.mubr.msk.bf16.vlgmr.msra.gmra.mrb[12].mxu1 %vm1598_vm15, %v1812_v36  ;;  %4870 = vmatprep.subr.bf16.mxu0 %v5673_v49  ;;  %v5499_v36 = vld [vmem:[%s7104_s9 + $0x8] sm:$0xff]  }
 0x5ef   :  { %4940 = vmatprep.mubr.msk.bf16.mxu1 %vm5676_vm14, %v5673_v49  ;;  %4925 = vmatpush3.bf16.msra.mxu1 %v5460_v1 }
 0x5f0   :  { %4926 = vmatprep.subr.bf16.mxu1 %v5673_v49 }
 0x5f1   :  { %4871 = vmatpush3.bf16.msra.mxu0 %v5446_v38 }
 0x5f2   :  { %4872 = vmatprep.subr.bf16.mxu0 %v5673_v49 }
 0x5f3   :  { %4927 = vmatpush3.bf16.msra.mxu1 %v5461_v5 }
 0x5f4   :  { %4928 = vmatprep.subr.bf16.mxu1 %v5673_v49 }
 0x5f5   :  { %4873 = vmatpush3.bf16.msra.mxu0 %v5447_v39 }
 0x5f6   :  { %4874 = vmatprep.subr.bf16.mxu0 %v5673_v49 }
 0x5f7   :  { %4929 = vmatpush3.bf16.msra.mxu1 %v5462_v10 }
 0x5f8   :  { %4930 = vmatprep.subr.bf16.mxu1 %v5673_v49 }
 0x5f9   :  { %4875 = vmatpush3.bf16.msra.mxu0 %v5448_v41 }
 0x5fa   :  { %4876 = vmatprep.subr.bf16.mxu0 %v5673_v49 }
 0x5fb   :  { %4931 = vmatpush3.bf16.msra.mxu1 %v5463_v12 }
 0x5fc   :  { %4932 = vmatprep.subr.bf16.mxu1 %v5673_v49 }
 0x5fd   :  { %4877 = vmatpush3.bf16.msra.mxu0 %v5449_v42 }
 0x5fe   :  { %4882 = vmatprep.subr.bf16.mxu0 %v5673_v49 }
 0x5ff   :  { %4933 = vmatpush3.bf16.msra.mxu1 %v5464_v13 }
 0x600   :  { %4879 = vmatmul.mubr.msk.bf16.vlgmr.msra.gmra.mrb[16].mxu0 %vm1598_vm15, %v1543_v34  ;;  %4934 = vmatprep.subr.bf16.mxu1 %v5673_v49 }
 0x601   :  { %4883 = vmatpush3.bf16.msra.mxu0 %v5450_v44  ;;  %4892 = vmatprep.mubr.msk.bf16.mxu0 %vm5676_vm14, %v5673_v49 }
 0x602   :  { %4884 = vmatprep.subr.bf16.mxu0 %v5673_v49 }
 0x603   :  { %4935 = vmatpush3.bf16.msra.mxu1 %v5465_v7 }
 0x604   :  { %4936 = vmatprep.subr.bf16.mxu1 %v5673_v49 }
 0x605   :  { %4885 = vmatpush3.bf16.msra.mxu0 %v5451_v45 }
 0x606   :  { %4886 = vmatprep.subr.bf16.mxu0 %v5673_v49 }
 0x607   :  { %4937 = vmatpush3.bf16.msra.mxu1 %v5466_v9  ;;  %v5468_v9 = vld [vmem:[%s7096_s1 + $0x20] ss:$8 sps:$4 sm:$0xff]  }
 0x608   :  { %4938 = vmatprep.subr.bf16.mxu1 %v5673_v49 }
 0x609   :  { %4887 = vmatpush3.bf16.msra.mxu0 %v5452_v47 }
 0x60a   :  { %4888 = vmatprep.subr.bf16.mxu0 %v5673_v49 }
 0x60b   :  { %4939 = vmatpush3.bf16.msra.mxu1 %v2042_v16 }
 0x60c   :  { %2235 = vmatprep.subr.bf16.mxu1 %v5470_v18 }
 0x60d   :  { %4889 = vmatpush3.bf16.msra.mxu0 %v5453_v48 }
 0x60e   :  { %4890 = vmatprep.subr.bf16.mxu0 %v5673_v49 }
 0x611   :  { %4891 = vmatpush3.bf16.msra.mxu0 %v5454_v51  ;;  %v4500_v51 = vld [vmem:[%s7095_s0 + $0x20] sm:$0xff] }
 0x612   :  { %4910 = vmatprep.subr.bf16.mxu0 %v5673_v49 }
 0x614   :  { %4893 = vmatmul.mubr.msk.bf16.vlgmr.msra.gmra.mrb[20].mxu0 %vm1598_vm15, %v1726_v54 }
 0x615   :  { %4911 = vmatpush3.bf16.msra.mxu0 %v5455_v52  ;;  %4920 = vmatprep.mubr.msk.bf16.mxu0 %vm5676_vm14, %v5673_v49  ;;  %v4501_v52 = vld [vmem:[%s7095_s0 + $0x28] sm:$0xff] }
 0x616   :  { %4912 = vmatprep.subr.bf16.mxu0 %v5673_v49  ;;  %v6484_v54 = vpack.c.bf16 %v4501_v52, %v4500_v51  ;;  %v5491_v51 = vld [vmem:[%s7096_s1 + $0x74] ss:$8 sps:$4 sm:$0xff]   ;;  %v5489_v52 = vld [vmem:[%s7096_s1 + $0x70] ss:$8 sps:$4 sm:$0xff]  }
 0x618   :  { %v2197_v1 = vshll.u32 %v6484_v54, 16  ;;  %v2195_v15 = vshrl.u32 %v6484_v54, 16 }
 0x619   :  { %4913 = vmatpush3.bf16.msra.mxu0 %v5456_v55  ;;  %v4502_v55 = vld [vmem:[%s7095_s0 + $0x30] sm:$0xff] }
 0x61a   :  { %4914 = vmatprep.subr.bf16.mxu0 %v5673_v49  ;;  %v2199_v16 = vrot.slane %v2197_v1, 1 }
 0x61d   :  { %4915 = vmatpush3.bf16.msra.mxu0 %v5457_v57  ;;  %v4503_v57 = vld [vmem:[%s7095_s0 + $0x38] sm:$0xff] }
 0x61e   :  { %4916 = vmatprep.subr.bf16.mxu0 %v5673_v49 }
 0x621   :  { %4917 = vmatpush3.bf16.msra.mxu0 %v5458_v58 }
 0x622   :  { %4918 = vmatprep.subr.bf16.mxu0 %v5673_v49 }
 0x625   :  { %4919 = vmatpush3.bf16.msra.mxu0 %v5459_v60  ;;  %v1973_v60 = vld [vmem:[%s7101_s6] sm:$0x1] }
 0x626   :  { %4944 = vmatprep.subr.bf16.mxu0 %v5673_v49 }
 0x628   :  { %4921 = vmatmul.mubr.msk.bf16.vlgmr.msra.gmra.mrb[24].mxu0 %vm1598_vm15, %v1898_v62  ;;  %v6495_v62 = vpack.c.bf16 %v4503_v57, %v4502_v55  ;;  %v5494_v55 = vld [vmem:[%s7096_s1 + $0x84] ss:$8 sps:$4 sm:$0xff]   ;;  %v2465_v57 = vrot.slane %v2195_v15, 1 }
 0x629   :  { %4956 = vmatprep.mubr.msk.bf16.mxu0 %vm5676_vm14, %v5673_v49  ;;  %4945 = vmatpush3.bf16.msra.mxu0 %v5498_v31  ;;  %v5479_v31 = vld [vmem:[%s7096_s1 + $0x14] ss:$8 sps:$4 sm:$0xff]  }
 0x62a   :  { %4946 = vmatprep.subr.bf16.mxu0 %v5673_v49  ;;  %v2202_v18 = vshll.u32 %v6495_v62, 16 }
 0x62d   :  { %4947 = vmatpush3.bf16.msra.mxu0 %v5499_v36 }
 0x62e   :  { %4948 = vmatprep.subr.bf16.mxu0 %v5673_v49 }
 0x6bf   :  { %v1636_v19 = vpop.f32.mrb[12].mxu0 }
 0x6c0   :  { %v4866_v21 = vpop.f32.mrb[13].mxu0 }
 0x6c1   :  { %v1639_v22 = vpop.f32.mrb[14].mxu0  ;;  %v1880_v24 = vpop.f32.mrb[12].mxu1  ;;  %v5473_v21 = vld [vmem:[%s7096_s1 + $0x34] ss:$8 sps:$4 sm:$0xff]  }
 0x6c2   :  { %v4867_v25 = vpop.f32.mrb[15].mxu0  ;;  %v4908_v27 = vpop.f32.mrb[13].mxu1  ;;  %v5471_v22 = vld [vmem:[%s7096_s1 + $0x30] ss:$8 sps:$4 sm:$0xff]  }
 0x6c3   :  { %v1883_v28 = vpop.f32.mrb[14].mxu1  ;;  %v2204_v25 = vrot.slane %v2202_v18, 1  ;;  %v5476_v27 = vld [vmem:[%s7096_s1 + $0x4] ss:$8 sps:$4 sm:$0xff]  }
 0x6c4   :  { %v4909_v30 = vpop.f32.mrb[15].mxu1 }
 0x6c5   :  { %v5474_v30 = vld [vmem:[%s7096_s1] ss:$8 sps:$4 sm:$0xff]  }
 0x6d3   :  { %v1708_v34 = vpop.f32.mrb[16].mxu0 }
 0x6d4   :  { %v1709_v0 = vadd.f32 %v1708_v34, %v1636_v19  ;;  %v4880_v35 = vpop.f32.mrb[17].mxu0  ;;  %v2206_v34 = vshrl.u32 %v6495_v62, 16 }
 0x6d5   :  { %v1711_v38 = vpop.f32.mrb[18].mxu0  ;;  %v5482_v35 = vld [vmem:[%s7096_s1 + $0x44] ss:$8 sps:$4 sm:$0xff]  }
 0x6d6   :  { %v4881_v39 = vpop.f32.mrb[19].mxu0  ;;  %v2208_v36 = vor.u32 %v2206_v34, %v2204_v25  ;;  %v5480_v38 = vld [vmem:[%s7096_s1 + $0x40] ss:$8 sps:$4 sm:$0xff]  }
 0x6d7   :  { %v5485_v39 = vld [vmem:[%s7096_s1 + $0x54] ss:$8 sps:$4 sm:$0xff]  }
 0x6e7   :  { %v1794_v41 = vpop.f32.mrb[20].mxu0 }
 0x6e8   :  { %v1800_v42 = vadd.f32 %v1794_v41, %v1709_v0  ;;  %v4894_v44 = vpop.f32.mrb[21].mxu0  ;;  %v5477_v0 = vld [vmem:[%s7096_s1 + $0x10] ss:$8 sps:$4 sm:$0xff]  }
 0x6e9   :  { %v1797_v45 = vpop.f32.mrb[22].mxu0  ;;  %v5483_v41 = vld [vmem:[%s7096_s1 + $0x50] ss:$8 sps:$4 sm:$0xff]   ;;  %v2371_v44 = vrot.slane %v6484_v54, 1 }
 0x6ea   :  { %v4895_v47 = vpop.f32.mrb[23].mxu0  ;;  %v1886_v48 = vadd.f32 %v1880_v24, %v1800_v42  ;;  %v2200_v24 = vor.u32 %v2199_v16, %v2195_v15  ;;  %v5488_v42 = vld [vmem:[%s7096_s1 + $0x64] ss:$8 sps:$4 sm:$0xff]   ;;  %v2372_v45 = vrot.slane %v6495_v62, 1  ;;  %v2563_v15 = vrot.slane %v6484_v54, 2 }
 0x6eb   :  { %v2564_v16 = vrot.slane %v6495_v62, 2 }
 0x6ec   :  { %v2205_v28 = vsel %vm111_vm0, %v2200_v24, %v2204_v25  ;;  %v2373_v47 = vsel %vm291_vm3, %v2371_v44, %v2372_v45  ;;  %v1991_v24 = vld [vmem:[%s7103_s8] sm:$0x1]  ;;  %vm2177_vm0 = vcmask 73728  }
 0x6fb   :  { %v1966_v58 = vpop.f32.mrb[24].mxu0 }
 0x6fc   :  { %v1972_v5 = vadd.f32 %v1966_v58, %v1886_v48  ;;  %v4922_v10 = vpop.f32.mrb[25].mxu0  ;;  %v5486_v48 = vld [vmem:[%s7096_s1 + $0x60] ss:$8 sps:$4 sm:$0xff]   ;;  %v2469_v58 = vrot.slane %v2202_v18, 2  ;;  %v2565_v18 = vsel %vm487_vm2, %v2563_v15, %v2564_v16 }
 0x6fd   :  { %v1969_v12 = vpop.f32.mrb[26].mxu0  ;;  %v5516_v15 = vld [vmem:[%s7098_s3 + $0x98] ss:$8 sps:$4 sm:$0xff]  }
 0x6fe   :  { %v1974_v13 = vadd.f32 %v1973_v60, %v1972_v5  ;;  %v4923_v7 = vpop.f32.mrb[27].mxu0  ;;  %v2468_v60 = vrot.slane %v2206_v34, 1  ;;  %v2466_v5 = vrot.slane %v2197_v1, 2  ;;  %v5495_v1 = vld [vmem:[%s7096_s1 + $0x90] ss:$8 sps:$4 sm:$0xff]  }
 0x6ff   :  { %v5492_v7 = vld [vmem:[%s7096_s1 + $0x80] ss:$8 sps:$4 sm:$0xff]  }
 0x700   :  { %v1975_v19 = vpack.c.bf16 %v1974_v13, %v1974_v13  ;;  %v2467_v10 = vor.u32 %v2466_v5, %v2465_v57  ;;  %v2470_v12 = vor.u32 %v2469_v58, %v2468_v60  ;;  %v5645_v57 = vld [vmem:[%s7106_s11 + $0x8] sm:$0x3f]  ;;  %v5506_v58 = vld [vmem:[%s7098_s3 + $0x5c] ss:$8 sps:$4 sm:$0xff]   ;;  %v5504_v60 = vld [vmem:[%s7098_s3 + $0x58] ss:$8 sps:$4 sm:$0xff]  }
 0x701   :  { %v5509_v5 = vld [vmem:[%s7098_s3 + $0x6c] ss:$8 sps:$4 sm:$0xff]  }
 0x702   :  { %4941 = vmatmul.mubr.msk.bf16.vlgmr.msra.gmra.mrb[16].mxu1 %vm2037_vm6, %v1975_v19  ;;  %v2471_v13 = vsel %vm387_vm4, %v2467_v10, %v2470_v12  ;;  %v5500_v19 = vld [vmem:[%s7104_s9 + $0x10] sm:$0xff]  }
 0x703   :  { %2236 = vmatpush1.bf16.msra.mxu1 %v5468_v9  ;;  %2267 = vmatprep.mubr.bf16.mxu1 %v5672_v2  ;;  %v5497_v9 = vld [vmem:[%s7096_s1 + $0x94] ss:$8 sps:$4 sm:$0xff]   ;;  %v5507_v10 = vld [vmem:[%s7098_s3 + $0x68] ss:$8 sps:$4 sm:$0xff]  }
 0x704   :  { %2237 = vmatprep.subr.bf16.mxu1 %v5473_v21  ;;  %4949 = vmatpush3.bf16.msra.mxu0 %v5500_v19  ;;  %v5503_v21 = vld [vmem:[%s7104_s9 + $0x28] ss:$0 sps:$4 sm:$0x33]  }
 0x705   :  { %4950 = vmatprep.subr.bf16.mxu0 %v5673_v49 }
 0x707   :  { %2238 = vmatpush1.bf16.msra.mxu1 %v5471_v22  ;;  %v2135_v22 = vsel %vm850_vm10, %v5503_v21, 0  ;;  %v4554_v21 = vld [vmem:[%s7097_s2] ss:$0 sm:$0xff] }
 0x708   :  { %2312 = vmatprep.subr.bf16.mxu1 %v5476_v27 }
 0x70a   :  { %4512 = vmatmul.mubr.msk.bf16.vlgmr.msra.gmra.mrb[20].mxu1 %vm147_vm1, %v2205_v28 }
 0x70b   :  { %2277 = vmatprep.mubr.bf16.mxu1 %v5672_v2  ;;  %2313 = vmatpush1.bf16.msra.mxu1 %v5474_v30 }
 0x70c   :  { %2314 = vmatprep.subr.bf16.mxu1 %v5479_v31 }
 0x70f   :  { %2315 = vmatpush1.bf16.msra.mxu1 %v5477_v0 }
 0x710   :  { %2400 = vmatprep.subr.bf16.mxu1 %v5482_v35 }
 0x712   :  { %4513 = vmatmul.mubr.msk.bf16.gmra.mrb[24].mxu1 %vm147_vm1, %v2208_v36 }
 0x713   :  { %2344 = vmatprep.mubr.bf16.mxu1 %v5672_v2 }
 0x71a   :  { %4518 = vmatmul.mubr.msk.bf16.vlgmr.msra.gmra.mrb[20].mxu1 %vm147_vm1, %v6484_v54  ;;  %v5501_v54 = vld [vmem:[%s7104_s9 + $0x18] sm:$0xff]  }
 0x71b   :  { %2354 = vmatprep.mubr.bf16.mxu1 %v5672_v2  ;;  %2401 = vmatpush1.bf16.msra.mxu1 %v5480_v38 }
 0x71c   :  { %2402 = vmatprep.subr.bf16.mxu1 %v5485_v39  ;;  %4951 = vmatpush3.bf16.msra.mxu0 %v5501_v54  ;;  %v5523_v54 = vld [vmem:[%s7098_s3 + $0x4] ss:$8 sps:$4 sm:$0xff]  }
 0x71d   :  { %4952 = vmatprep.subr.bf16.mxu0 %v5673_v49 }
 0x71f   :  { %2403 = vmatpush1.bf16.msra.mxu1 %v5483_v41 }
 0x720   :  { %2498 = vmatprep.subr.bf16.mxu1 %v5488_v42 }
 0x722   :  { %4519 = vmatmul.mubr.msk.bf16.gmra.mrb[24].mxu1 %vm147_vm1, %v6495_v62  ;;  %v5502_v62 = vld [vmem:[%s7104_s9 + $0x20] sm:$0xff]  }
 0x723   :  { %2432 = vmatprep.mubr.bf16.mxu1 %v5672_v2  ;;  %4953 = vmatpush3.bf16.msra.mxu0 %v5502_v62 }
 0x724   :  { %4954 = vmatprep.subr.bf16.mxu0 %v5673_v49 }
 0x727   :  { %4955 = vmatpush3.bf16.msra.mxu0 %v2135_v22 }
 0x72a   :  { %4528 = vmatmul.mubr.msk.bf16.vlgmr.msra.gmra.mrb[20].mxu1 %vm147_vm1, %v2373_v47 }
 0x72b   :  { %2442 = vmatprep.mubr.bf16.mxu1 %v5672_v2  ;;  %2499 = vmatpush1.bf16.msra.mxu1 %v5486_v48 }
 0x72c   :  { %2500 = vmatprep.subr.bf16.mxu1 %v5491_v51 }
 0x72f   :  { %2501 = vmatpush1.bf16.msra.mxu1 %v5489_v52 }
 0x730   :  { %2592 = vmatprep.subr.bf16.mxu1 %v5494_v55  ;;  %v5644_v55 = vld [vmem:[%s7106_s11] sm:$0xff] }
 0x732   :  { %4529 = vmatmul.mubr.msk.bf16.gmra.mrb[24].mxu1 %vm147_vm1, %v2372_v45 }
 0x733   :  { %2530 = vmatprep.mubr.bf16.mxu1 %v5672_v2 }
 0x73a   :  { %4538 = vmatmul.mubr.msk.bf16.vlgmr.msra.gmra.mrb[20].mxu1 %vm147_vm1, %v2471_v13  ;;  %v5510_v13 = vld [vmem:[%s7098_s3 + $0x78] ss:$8 sps:$4 sm:$0xff]  }
 0x73b   :  { %2540 = vmatprep.mubr.bf16.mxu1 %v5672_v2  ;;  %2593 = vmatpush1.bf16.msra.mxu1 %v5492_v7  ;;  %v5515_v7 = vld [vmem:[%s7098_s3 + $0x8c] ss:$8 sps:$4 sm:$0xff]  }
 0x73c   :  { %2594 = vmatprep.subr.bf16.mxu1 %v5497_v9  ;;  %v5513_v9 = vld [vmem:[%s7098_s3 + $0x88] ss:$8 sps:$4 sm:$0xff]  }
 0x73f   :  { %2595 = vmatpush1.bf16.msra.mxu1 %v5495_v1  ;;  %v5518_v1 = vld [vmem:[%s7098_s3 + $0x9c] ss:$8 sps:$4 sm:$0xff]  }
 0x742   :  { %4539 = vmatmul.mubr.msk.bf16.gmra.mrb[24].mxu1 %vm147_vm1, %v2470_v12  ;;  %v5512_v12 = vld [vmem:[%s7098_s3 + $0x7c] ss:$8 sps:$4 sm:$0xff]  }
 0x743   :  { %2624 = vmatprep.mubr.bf16.mxu1 %v5672_v2 }
 0x74a   :  { %4548 = vmatmul.mubr.msk.bf16.vlgmr.msra.gmra.mrb[20].mxu1 %vm147_vm1, %v2565_v18 }
 0x74b   :  { %2634 = vmatprep.mubr.bf16.mxu1 %v5672_v2 }
 0x752   :  { %4549 = vmatmul.mubr.msk.bf16.gmra.mrb[24].mxu1 %vm147_vm1, %v2564_v16  ;;  %v4567_v16 = vld [vmem:[%s7098_s3 + $0xa8] sm:$0x33] }
 0x753   :  { %3511 = vmatprep.mubr.f32.mxu1 %v5673_v49  ;;  %v4579_v18 = vcombine.high %v4567_v16, %v4567_v16  ;;  %v4578_v19 = vcombine.low %v4567_v16, %v4567_v16  ;;  %v5555_v16 = vld [vmem:[%s7098_s3 + $0x108] ss:$8 sps:$4 sm:$0xff]  }
 0x755   :  { %v2915_v62 = vsel %vm850_vm10, %v4578_v19, 0  ;;  %v5560_v19 = vld [vmem:[%s7098_s3 + $0x11c] ss:$8 sps:$4 sm:$0xff]  }
 0x7d5   :  { %v2078_v25 = vpop.f32.mrb[16].mxu1 }
 0x7d6   :  { %v2079_v27 = vadd.f32 %v2078_v25, %v1991_v24  ;;  %v4942_v28 = vpop.f32.mrb[17].mxu1 }
 0x7d7   :  { %v2081_v30 = vpop.f32.mrb[18].mxu1 }
 0x7d8   :  { %5634 = vtanh.f32 %v2079_v27  ;;  %v4943_v31 = vpop.f32.mrb[19].mxu1 }
 0x7e2   :  { %v5635_v34 = vpop.eup %5634 }
 0x7e3   :  { %v2085_v0 = vpack.c.bf16 %v5635_v34, %v5635_v34 }
 0x7e5   :  { %4957 = vmatmul.mubr.msk.bf16.vlgmr.msra.gmra.mrb[28].mxu0 %vm846_vm11, %v2085_v0 }
 0x7e6   :  { %2723 = vmatprep.mubr.f32.mxu0 %v5673_v49 }
 0x81d   :  { %v2626_v35 = vpop.f32.mrb[20].mxu1 }
 0x81e   :  { %v2628_v36 = vpop.f32.mrb[21].mxu1 }
 0x81f   :  { %v2630_v38 = vpop.f32.mrb[22].mxu1 }
 0x820   :  { %v5144_v39 = vpack.c.bf16 %v2630_v38, %v2626_v35  ;;  %v2632_v41 = vpop.f32.mrb[23].mxu1 }
 0x821   :  { %v5142_v42 = vpack.c.bf16 %v2632_v41, %v2628_v36 }
 0x823   :  { %5143 = vmatprep.subr.bf16.mxu0 %v5142_v42  ;;  %v5521_v42 = vld [vmem:[%s7098_s3] ss:$8 sps:$4 sm:$0xff]  }
 0x824   :  { %5145 = vmatpush1.bf16.msra.mxu0 %v5144_v39 }
 0x825   :  { %v2636_v44 = vpop.f32.mrb[24].mxu1 }
 0x826   :  { %v2638_v45 = vpop.f32.mrb[25].mxu1 }
 0x827   :  { %v2640_v47 = vpop.f32.mrb[26].mxu1 }
 0x828   :  { %v5149_v48 = vpack.c.bf16 %v2640_v47, %v2636_v44  ;;  %v2642_v51 = vpop.f32.mrb[27].mxu1 }
 0x829   :  { %v5146_v52 = vpack.c.bf16 %v2642_v51, %v2638_v45  ;;  %v5526_v45 = vld [vmem:[%s7098_s3 + $0x14] ss:$8 sps:$4 sm:$0xff]   ;;  %v5529_v51 = vld [vmem:[%s7098_s3 + $0x24] ss:$8 sps:$4 sm:$0xff]  }
 0x82b   :  { %5148 = vmatprep.subr.msk.bf16.mxu0 %vm5869_vm7, %v5146_v52  ;;  %v5527_v52 = vld [vmem:[%s7098_s3 + $0x20] ss:$8 sps:$4 sm:$0xff]  }
 0x82c   :  { %5151 = vmatpush1.bf16.msk.msra.mxu0 %vm5869_vm7, %v5149_v48  ;;  %v5524_v48 = vld [vmem:[%s7098_s3 + $0x10] ss:$8 sps:$4 sm:$0xff]  }
 0x82d   :  { %5152 = vmatprep.subr.bf16.mxu0 %v5675_v4 }
 0x82f   :  { %4552 = vmatmul.mubr.msk.f32.vlgmr.msra.gmra.mrb[32].mxu0 %vm578_vm8, %v5644_v55  ;;  %v5532_v55 = vld [vmem:[%s7098_s3 + $0x34] ss:$8 sps:$4 sm:$0xff]  }
 0x830   :  { %2729 = vmatprep.mubr.f32.mxu0 %v5673_v49  ;;  %5154 = vmatpush1.bf16.msra.mxu0 %v5886_v3  ;;  %v2097_v3 = vld [vmem:[%s7105_s10] sm:$0x1] }
 0x831   :  { %5155 = vmatprep.subr.bf16.mxu0 %v5675_v4 }
 0x833   :  { %4553 = vmatmul.mubr.msk.f32.gmra.mrb[34].mxu0 %vm578_vm8, %v5645_v57  ;;  %v5530_v57 = vld [vmem:[%s7098_s3 + $0x30] ss:$8 sps:$4 sm:$0xff]  }
 0x834   :  { %5157 = vmatpush1.bf16.msra.mxu0 %v5901_v8 }
 0x835   :  { %5158 = vmatprep.subr.bf16.mxu0 %v5675_v4 }
 0x838   :  { %5160 = vmatpush1.bf16.msra.mxu0 %v5912_v11 }
 0x839   :  { %5161 = vmatprep.subr.bf16.mxu0 %v5675_v4 }
 0x83c   :  { %5163 = vmatpush1.bf16.msra.mxu0 %v5922_v14 }
 0x83d   :  { %5164 = vmatprep.subr.bf16.mxu0 %v5675_v4 }
 0x840   :  { %5166 = vmatpush1.bf16.msra.mxu0 %v5932_v17 }
 0x841   :  { %5167 = vmatprep.subr.bf16.mxu0 %v5675_v4 }
 0x844   :  { %5169 = vmatpush1.bf16.msra.mxu0 %v5942_v20 }
 0x845   :  { %5170 = vmatprep.subr.bf16.mxu0 %v5675_v4 }
 0x848   :  { %5172 = vmatpush1.bf16.msra.mxu0 %v5952_v23 }
 0x849   :  { %5173 = vmatprep.subr.bf16.mxu0 %v5675_v4 }
 0x84c   :  { %5175 = vmatpush1.bf16.msra.mxu0 %v5962_v26 }
 0x84d   :  { %5176 = vmatprep.subr.bf16.mxu0 %v5675_v4 }
 0x850   :  { %5178 = vmatpush1.bf16.msra.mxu0 %v5972_v29 }
 0x851   :  { %5179 = vmatprep.subr.bf16.mxu0 %v5675_v4 }
 0x854   :  { %5181 = vmatpush1.bf16.msra.mxu0 %v5982_v32 }
 0x855   :  { %2789 = vmatprep.subr.mxu0 %v5673_v49 }
 0x858   :  { %2790 = vmatpush1.msra.mxu0 %v5646_v61  ;;  %v5535_v61 = vld [vmem:[%s7098_s3 + $0x44] ss:$8 sps:$4 sm:$0xff]  }
 0x859   :  { %2920 = vmatprep.subr.bf16.mxu0 %v5506_v58  ;;  %v5544_v58 = vld [vmem:[%s7098_s3 + $0xd0] ss:$8 sps:$4 sm:$0xff]  }
 0x8b8   :  { %v2171_v8 = vpop.f32.mrb[28].mxu0 }
 0x8b9   :  { %v2172_v11 = vadd.f32 %v2171_v8, %v2097_v3  ;;  %v4958_v14 = vpop.f32.mrb[29].mxu0  ;;  %v2837_v3 = vld [vmem:[%s7098_s3 + $0x50] sm:$0x33]  ;;  %v5533_v8 = vld [vmem:[%s7098_s3 + $0x40] ss:$8 sps:$4 sm:$0xff]  }
 0x8ba   :  { %v2174_v17 = vpop.f32.mrb[30].mxu0  ;;  %v4592_v14 = vcombine.low %v2837_v3, %v2837_v3 }
 0x8bb   :  { %2178 = vst.msk [vmem:[#allocation2] sm:$0x1] %vm2177_vm0, %v2172_v11  ;;  %v4959_v20 = vpop.f32.mrb[31].mxu0  ;;  %v4593_v11 = vcombine.high %v2837_v3, %v2837_v3 }
 0x8bc   :  { %v3021_v17 = vsel %vm850_vm10, %v4592_v14, 0  ;;  %v5540_v20 = vld [vmem:[%s7098_s3 + $0xb4] ss:$8 sps:$4 sm:$0xff]  }
 0x902   :  { %v2725_v23 = vpop.f32.mrb[32].mxu0 }
 0x903   :  { %v2727_v26 = vpop.f32.mrb[33].mxu0 }
 0x904   :  { %4555 = vmatprep.mubr.msk.f32.mxu0 %vm676_vm9, %v2727_v26  ;;  %v5543_v26 = vld [vmem:[%s7098_s3 + $0xc4] ss:$8 sps:$4 sm:$0xff]  }
 0x905   :  { %2814 = vmatmul.mubr.f32.vlgmr.msra.gmra.mrb[36].mxu0 %v2725_v23  ;;  %v5538_v23 = vld [vmem:[%s7098_s3 + $0xb0] ss:$8 sps:$4 sm:$0xff]  }
 0x906   :  { %v2731_v29 = vpop.f32.mrb[34].mxu0  ;;  %2921 = vmatpush1.bf16.msra.mxu0 %v5504_v60  ;;  %v5549_v60 = vld [vmem:[%s7098_s3 + $0xe4] ss:$8 sps:$4 sm:$0xff]  }
 0x907   :  { %v2733_v32 = vpop.f32.mrb[35].mxu0  ;;  %2922 = vmatprep.subr.bf16.mxu0 %v5509_v5  ;;  %v5547_v5 = vld [vmem:[%s7098_s3 + $0xe0] ss:$8 sps:$4 sm:$0xff]  }
 0x908   :  { %4556 = vmatprep.mubr.msk.f32.mxu0 %vm676_vm9, %v2733_v32  ;;  %v5546_v32 = vld [vmem:[%s7098_s3 + $0xd4] ss:$8 sps:$4 sm:$0xff]  }
 0x909   :  { %2819 = vmatmul.mubr.f32.gmra.mrb[38].mxu0 %v2731_v29  ;;  %v5541_v29 = vld [vmem:[%s7098_s3 + $0xc0] ss:$8 sps:$4 sm:$0xff]  }
 0x90a   :  { %2952 = vmatprep.mubr.bf16.mxu0 %v5672_v2  ;;  %2923 = vmatpush1.bf16.msra.mxu0 %v5507_v10  ;;  %v5552_v10 = vld [vmem:[%s7098_s3 + $0xf4] ss:$8 sps:$4 sm:$0xff]  }
 0x90b   :  { %2924 = vmatprep.subr.bf16.mxu0 %v5512_v12  ;;  %v4606_v12 = vld [vmem:[%s7098_s3 + $0x100] sm:$0x33] }
 0x90e   :  { %2925 = vmatpush1.bf16.msra.mxu0 %v5510_v13  ;;  %v5550_v13 = vld [vmem:[%s7098_s3 + $0xf0] ss:$8 sps:$4 sm:$0xff]  }
 0x90f   :  { %2926 = vmatprep.subr.bf16.mxu0 %v5515_v7  ;;  %v4618_v7 = vcombine.high %v4606_v12, %v4606_v12 }
 0x912   :  { %2927 = vmatpush1.bf16.msra.mxu0 %v5513_v9  ;;  %v4617_v9 = vcombine.low %v4606_v12, %v4606_v12  ;;  %v5599_v12 = vld [vmem:[%s7100_s5 + $0x8] sm:$0xff]  }
 0x913   :  { %2928 = vmatprep.subr.bf16.mxu0 %v5518_v1 }
 0x914   :  { %v3141_v1 = vsel %vm850_vm10, %v4617_v9, 0  ;;  %v5603_v9 = vld [vmem:[%s7100_s5 + $0x20] sm:$0xff]  }
 0x916   :  { %2929 = vmatpush1.bf16.msra.mxu0 %v5516_v15  ;;  %v5557_v15 = vld [vmem:[%s7098_s3 + $0x10c] ss:$8 sps:$4 sm:$0xff]  }
 0x917   :  { %4580 = vmatprep.subr.msk.bf16.mxu0 %vm850_vm10, %v4579_v18 }
 0x91a   :  { %2931 = vmatpush1.bf16.msra.mxu0 %v2915_v62  ;;  %v5563_v62 = vld [vmem:[%s7098_s3 + $0x12c] ss:$8 sps:$4 sm:$0xff]  }
 0x91b   :  { %3026 = vmatprep.subr.bf16.mxu0 %v5523_v54  ;;  %v5558_v54 = vld [vmem:[%s7098_s3 + $0x118] ss:$8 sps:$4 sm:$0xff]  }
 0x9d8   :  { %v2815_v22 = vpop.f32.mrb[36].mxu0 }
 0x9d9   :  { %v2817_v24 = vpop.f32.mrb[37].mxu0  ;;  %v2816_v25 = vadd.f32 %v4554_v21, %v2815_v22  ;;  %v5566_v22 = vld [vmem:[%s7098_s3 + $0x13c] ss:$8 sps:$4 sm:$0xff]  }
 0x9da   :  { %v5564_v24 = vld [vmem:[%s7098_s3 + $0x138] ss:$8 sps:$4 sm:$0xff]  }
 0x9db   :  { %5636 = vtanh.f32 %v2816_v25  ;;  %v5569_v25 = vld [vmem:[%s7098_s3 + $0x14c] ss:$8 sps:$4 sm:$0xff]  }
 0x9dc   :  { %v2820_v27 = vpop.f32.mrb[38].mxu0 }
 0x9dd   :  { %v2821_v28 = vadd.f32 %v4554_v21, %v2820_v27  ;;  %v2822_v30 = vpop.f32.mrb[39].mxu0  ;;  %v5561_v21 = vld [vmem:[%s7098_s3 + $0x128] ss:$8 sps:$4 sm:$0xff]   ;;  %v4631_v27 = vld [vmem:[%s7098_s3 + $0x158] sm:$0x33] }
 0x9de   :  { %v4643_v30 = vcombine.high %v4631_v27, %v4631_v27 }
 0x9df   :  { %5638 = vtanh.f32 %v2821_v28  ;;  %v5567_v28 = vld [vmem:[%s7098_s3 + $0x148] ss:$8 sps:$4 sm:$0xff]  }
 0x9e5   :  { %v5637_v31 = vpop.eup %5636 }
 0x9e9   :  { %v5639_v34 = vpop.eup %5638 }
 0x9ea   :  { %v6700_v0 = vpack.c.bf16 %v5639_v34, %v5637_v31  ;;  %v4642_v31 = vcombine.low %v4631_v27, %v4631_v27 }
 0x9ec   :  { %v2850_v35 = vshrl.u32 %v6700_v0, 16  ;;  %v2852_v36 = vshll.u32 %v6700_v0, 16  ;;  %v3081_v18 = vrot.slane %v6700_v0, 1  ;;  %v3266_v34 = vsel %vm850_vm10, %v4642_v31, 0  ;;  %v5616_v31 = vld [vmem:[%s7102_s7 + $0x10] sm:$0xff]  }
 0x9ee   :  { %v2854_v38 = vrot.slane %v2852_v36, 1  ;;  %v6704_v39 = vrot.slane %v2850_v35, 1  ;;  %v6706_v41 = vrot.slane %v2852_v36, 2  ;;  %v5572_v36 = vld [vmem:[%s7098_s3 + $0x160] ss:$8 sps:$4 sm:$0xff]  }
 0x9f0   :  { %v2855_v44 = vor.u32 %v2854_v38, %v2850_v35  ;;  %v3206_v47 = vor.u32 %v6706_v41, %v6704_v39  ;;  %v5574_v35 = vld [vmem:[%s7098_s3 + $0x164] ss:$8 sps:$4 sm:$0xff]   ;;  %v5577_v38 = vld [vmem:[%s7098_s3 + $0x174] ss:$8 sps:$4 sm:$0xff]  }
 0x9f1   :  { %v5583_v39 = vld [vmem:[%s7098_s3 + $0x194] ss:$8 sps:$4 sm:$0xff]   ;;  %v5586_v41 = vld [vmem:[%s7098_s3 + $0x1a4] ss:$8 sps:$4 sm:$0xff]  }
 0x9f2   :  { %4581 = vmatmul.mubr.msk.bf16.vlgmr.msra.gmra.mrb[40].mxu0 %vm846_vm11, %v2855_v44  ;;  %v5580_v44 = vld [vmem:[%s7098_s3 + $0x184] ss:$8 sps:$4 sm:$0xff]  }
 0x9f3   :  { %3027 = vmatpush1.bf16.msra.mxu0 %v5521_v42  ;;  %3058 = vmatprep.mubr.bf16.mxu0 %v5672_v2  ;;  %v5575_v42 = vld [vmem:[%s7098_s3 + $0x170] ss:$8 sps:$4 sm:$0xff]  }
 0x9f4   :  { %3028 = vmatprep.subr.bf16.mxu0 %v5526_v45  ;;  %v5578_v45 = vld [vmem:[%s7098_s3 + $0x180] ss:$8 sps:$4 sm:$0xff]  }
 0x9f7   :  { %3029 = vmatpush1.bf16.msra.mxu0 %v5524_v48  ;;  %v5584_v48 = vld [vmem:[%s7098_s3 + $0x1a0] ss:$8 sps:$4 sm:$0xff]  }
 0x9f8   :  { %3030 = vmatprep.subr.bf16.mxu0 %v5529_v51 }
 0x9fb   :  { %3031 = vmatpush1.bf16.msra.mxu0 %v5527_v52 }
 0x9fc   :  { %3032 = vmatprep.subr.bf16.mxu0 %v5532_v55 }
 0x9ff   :  { %3033 = vmatpush1.bf16.msra.mxu0 %v5530_v57  ;;  %v3329_v57 = vrot.slane %v6700_v0, 2 }
 0xa00   :  { %3034 = vmatprep.subr.bf16.mxu0 %v5535_v61 }
 0xa03   :  { %3035 = vmatpush1.bf16.msra.mxu0 %v5533_v8 }
 0xa04   :  { %4594 = vmatprep.subr.msk.bf16.mxu0 %vm850_vm10, %v4593_v11 }
 0xa07   :  { %3037 = vmatpush1.bf16.msra.mxu0 %v3021_v17 }
 0xa08   :  { %3146 = vmatprep.subr.bf16.mxu0 %v5540_v20  ;;  %v4674_v20 = vld [vmem:[%s7099_s4] ss:$0 sm:$0xff] }
 0xa0a   :  { %4595 = vmatmul.mubr.msk.bf16.vlgmr.msra.gmra.mrb[40].mxu0 %vm846_vm11, %v6700_v0  ;;  %v5647_v0 = vld [vmem:[%s7108_s13] sm:$0x1f] }
 0xa0b   :  { %3147 = vmatpush1.bf16.msra.mxu0 %v5538_v23  ;;  %3178 = vmatprep.mubr.bf16.mxu0 %v5672_v2 }
 0xa0c   :  { %3148 = vmatprep.subr.bf16.mxu0 %v5543_v26 }
 0xa0f   :  { %3149 = vmatpush1.bf16.msra.mxu0 %v5541_v29 }
 0xa10   :  { %3150 = vmatprep.subr.bf16.mxu0 %v5546_v32 }
 0xa13   :  { %3151 = vmatpush1.bf16.msra.mxu0 %v5544_v58 }
 0xa14   :  { %3152 = vmatprep.subr.bf16.mxu0 %v5549_v60  ;;  %v5597_v60 = vld [vmem:[%s7100_s5] sm:$0xff]  }
 0xa17   :  { %3153 = vmatpush1.bf16.msra.mxu0 %v5547_v5 }
 0xa18   :  { %3154 = vmatprep.subr.bf16.mxu0 %v5552_v10 }
 0xa1b   :  { %3155 = vmatpush1.bf16.msra.mxu0 %v5550_v13  ;;  %v5601_v13 = vld [vmem:[%s7100_s5 + $0x10] sm:$0xff]  }
 0xa1c   :  { %4619 = vmatprep.subr.msk.bf16.mxu0 %vm850_vm10, %v4618_v7  ;;  %v5602_v7 = vld [vmem:[%s7100_s5 + $0x18] sm:$0xff]  }
 0xa1f   :  { %3157 = vmatpush1.bf16.msra.mxu0 %v3141_v1  ;;  %v5604_v1 = vld [vmem:[%s7100_s5 + $0x50] sm:$0xff]  }
 0xa20   :  { %3271 = vmatprep.subr.bf16.mxu0 %v5557_v15  ;;  %v5605_v15 = vld [vmem:[%s7100_s5 + $0x58] sm:$0xff]  }
 0xa22   :  { %4620 = vmatmul.mubr.msk.bf16.vlgmr.msra.gmra.mrb[40].mxu0 %vm846_vm11, %v3081_v18  ;;  %v5607_v18 = vld [vmem:[%s7100_s5 + $0x68] sm:$0xff]  }
 0xa23   :  { %3272 = vmatpush1.bf16.msra.mxu0 %v5555_v16  ;;  %3303 = vmatprep.mubr.bf16.mxu0 %v5672_v2  ;;  %v5606_v16 = vld [vmem:[%s7100_s5 + $0x60] sm:$0xff]  }
 0xa24   :  { %3273 = vmatprep.subr.bf16.mxu0 %v5560_v19  ;;  %v5608_v19 = vld [vmem:[%s7100_s5 + $0x70] sm:$0xff]  }
 0xa27   :  { %3274 = vmatpush1.bf16.msra.mxu0 %v5558_v54  ;;  %v5609_v54 = vld [vmem:[%s7100_s5 + $0xa0] sm:$0xff]  }
 0xa28   :  { %3275 = vmatprep.subr.bf16.mxu0 %v5563_v62 }
 0xa2b   :  { %3276 = vmatpush1.bf16.msra.mxu0 %v5561_v21  ;;  %v5610_v21 = vld [vmem:[%s7100_s5 + $0xa8] sm:$0xff]  }
 0xa2c   :  { %3277 = vmatprep.subr.bf16.mxu0 %v5566_v22  ;;  %v5611_v22 = vld [vmem:[%s7100_s5 + $0xb0] sm:$0xff]  }
 0xa2f   :  { %3278 = vmatpush1.bf16.msra.mxu0 %v5564_v24  ;;  %v5612_v24 = vld [vmem:[%s7100_s5 + $0xb8] sm:$0xff]  }
 0xa30   :  { %3279 = vmatprep.subr.bf16.mxu0 %v5569_v25  ;;  %v5613_v25 = vld [vmem:[%s7100_s5 + $0xc0] sm:$0xff]  }
 0xa33   :  { %3280 = vmatpush1.bf16.msra.mxu0 %v5567_v28  ;;  %v5614_v28 = vld [vmem:[%s7102_s7] sm:$0xff]  }
 0xa34   :  { %4644 = vmatprep.subr.msk.bf16.mxu0 %vm850_vm10, %v4643_v30  ;;  %v5615_v30 = vld [vmem:[%s7102_s7 + $0x8] sm:$0xff]  }
 0xa37   :  { %3282 = vmatpush1.bf16.msra.mxu0 %v3266_v34  ;;  %v5617_v34 = vld [vmem:[%s7102_s7 + $0x18] sm:$0xff]  }
 0xa38   :  { %3394 = vmatprep.subr.bf16.mxu0 %v5574_v35  ;;  %v5618_v35 = vld [vmem:[%s7102_s7 + $0x20] sm:$0xff]  }
 0xa3a   :  { %4645 = vmatmul.mubr.msk.bf16.vlgmr.msra.gmra.mrb[40].mxu0 %vm846_vm11, %v3206_v47  ;;  %v4656_v47 = vld [vmem:[%s7098_s3 + $0x1b0] sm:$0x33] }
 0xa3b   :  { %3395 = vmatpush1.bf16.msra.mxu0 %v5572_v36  ;;  %3426 = vmatprep.mubr.bf16.mxu0 %v5672_v2  ;;  %v5581_v2 = vld [vmem:[%s7098_s3 + $0x190] ss:$8 sps:$4 sm:$0xff]   ;;  %v4668_v51 = vcombine.high %v4656_v47, %v4656_v47  ;;  %v4667_v52 = vcombine.low %v4656_v47, %v4656_v47  ;;  %v5619_v36 = vld [vmem:[%s7102_s7 + $0x28] sm:$0xff]  }
 0xa3c   :  { %3396 = vmatprep.subr.bf16.mxu0 %v5577_v38  ;;  %v5620_v38 = vld [vmem:[%s7102_s7 + $0x30] sm:$0xff]  }
 0xa3d   :  { %v3389_v55 = vsel %vm850_vm10, %v4667_v52, 0 }
 0xa3f   :  { %3397 = vmatpush1.bf16.msra.mxu0 %v5575_v42  ;;  %v5621_v42 = vld [vmem:[%s7102_s7 + $0x38] ss:$0 sps:$4 sm:$0xff]  }
 0xa40   :  { %3398 = vmatprep.subr.bf16.mxu0 %v5580_v44  ;;  %v4092_v44 = vsel %vm585_vm5, %v5621_v42, 0 }
 0xa43   :  { %3399 = vmatpush1.bf16.msra.mxu0 %v5578_v45  ;;  %v5622_v45 = vld [vmem:[%s7104_s9] sm:$0xff]  }
 0xa44   :  { %3400 = vmatprep.subr.bf16.mxu0 %v5583_v39  ;;  %v5623_v39 = vld [vmem:[%s7104_s9 + $0x8] sm:$0xff]  }
 0xa47   :  { %3401 = vmatpush1.bf16.msra.mxu0 %v5581_v2 }
 0xa48   :  { %3402 = vmatprep.subr.bf16.mxu0 %v5586_v41 }
 0xa4b   :  { %3403 = vmatpush1.bf16.msra.mxu0 %v5584_v48 }
 0xa4c   :  { %4669 = vmatprep.subr.msk.bf16.mxu0 %vm850_vm10, %v4668_v51 }
 0xa4f   :  { %3405 = vmatpush1.bf16.msra.mxu0 %v3389_v55 }
 0xa50   :  { %5002 = vmatprep.subr.bf16.mxu0 %v5673_v49 }
 0xa52   :  { %4670 = vmatmul.mubr.msk.bf16.vlgmr.msra.gmra.mrb[40].mxu0 %vm846_vm11, %v3329_v57 }
 0xa53   :  { %5012 = vmatprep.mubr.msk.bf16.mxu0 %vm5676_vm14, %v5673_v49 }
 0xb25   :  { %v3428_v61 = vpop.f32.mrb[40].mxu0 }
 0xb26   :  { %v3430_v3 = vpop.f32.mrb[41].mxu0 }
 0xb27   :  { %v3432_v8 = vpop.f32.mrb[42].mxu0 }
 0xb28   :  { %v5185_v11 = vpack.c.bf16 %v3432_v8, %v3428_v61  ;;  %v3434_v14 = vpop.f32.mrb[43].mxu0 }
 0xb29   :  { %v5182_v17 = vpack.c.bf16 %v3434_v14, %v3430_v3 }
 0xb2b   :  { %5184 = vmatprep.subr.msk.bf16.mxu1 %vm6199_vm12, %v5182_v17 }
 0xb2c   :  { %5187 = vmatpush1.bf16.msk.msra.mxu1 %vm6199_vm12, %v5185_v11 }
 0xb2d   :  { %5188 = vmatprep.subr.bf16.mxu1 %v5675_v4 }
 0xb2f   :  { %4673 = vmatmul.mubr.msk.f32.vlgmr.msra.gmra.mrb[28].mxu1 %vm1381_vm13, %v5647_v0 }
 0xb30   :  { %5190 = vmatpush1.bf16.msra.mxu1 %v6216_v37  ;;  %v5589_v37 = vld [vmem:[%s7100_s5 + $0x28] sm:$0xff]  }
 0xb31   :  { %5191 = vmatprep.subr.bf16.mxu1 %v5675_v4 }
 0xb34   :  { %5193 = vmatpush1.bf16.msra.mxu1 %v6227_v40 }
 0xb35   :  { %5194 = vmatprep.subr.bf16.mxu1 %v5675_v4 }
 0xb38   :  { %5196 = vmatpush1.bf16.msra.mxu1 %v6237_v43  ;;  %v5590_v43 = vld [vmem:[%s7100_s5 + $0x30] sm:$0xff]  }
 0xb39   :  { %5197 = vmatprep.subr.bf16.mxu1 %v5675_v4 }
 0xb3c   :  { %5199 = vmatpush1.bf16.msra.mxu1 %v6247_v46  ;;  %v5594_v46 = vld [vmem:[%s7100_s5 + $0x80] sm:$0xff]  }
 0xb3d   :  { %5200 = vmatprep.subr.bf16.mxu1 %v5675_v4 }
 0xb40   :  { %5202 = vmatpush1.bf16.msra.mxu1 %v6257_v50  ;;  %v5591_v50 = vld [vmem:[%s7100_s5 + $0x38] sm:$0xff]  }
 0xb41   :  { %5203 = vmatprep.subr.bf16.mxu1 %v5675_v4 }
 0xb44   :  { %5205 = vmatpush1.bf16.msra.mxu1 %v6267_v53  ;;  %v5596_v53 = vld [vmem:[%s7100_s5 + $0x88] sm:$0xff]  }
 0xb45   :  { %5206 = vmatprep.subr.bf16.mxu1 %v5675_v4 }
 0xb48   :  { %5208 = vmatpush1.bf16.msra.mxu1 %v6277_v56  ;;  %v5593_v56 = vld [vmem:[%s7100_s5 + $0x40] sm:$0xff]  }
 0xb49   :  { %5209 = vmatprep.subr.bf16.mxu1 %v5675_v4 }
 0xb4c   :  { %5211 = vmatpush1.bf16.msra.mxu1 %v6287_v59  ;;  %v5595_v59 = vld [vmem:[%s7100_s5 + $0x48] sm:$0xff]  }
 0xb4d   :  { %5212 = vmatprep.subr.bf16.mxu1 %v5675_v4 }
 0xb50   :  { %5214 = vmatpush1.bf16.msra.mxu1 %v6297_v63  ;;  %v5598_v63 = vld [vmem:[%s7100_s5 + $0x90] sm:$0xff]  }
 0xb51   :  { %5215 = vmatprep.subr.bf16.mxu1 %v5675_v4  ;;  %v5592_v4 = vld [vmem:[%s7100_s5 + $0x78] sm:$0xff]  }
 0xb52   :  { %5003 = vmatpush3.bf16.msra.mxu0 %v5592_v4 }
 0xb53   :  { %5004 = vmatprep.subr.bf16.mxu0 %v5673_v49 }
 0xb54   :  { %5217 = vmatpush1.bf16.msra.mxu1 %v6308_v6  ;;  %v5600_v6 = vld [vmem:[%s7100_s5 + $0x98] sm:$0xff]  }
 0xb55   :  { %4960 = vmatprep.subr.bf16.mxu1 %v5673_v49 }
 0xb56   :  { %5005 = vmatpush3.bf16.msra.mxu0 %v5594_v46  ;;  %v4024_v46 = vld [vmem:[%s7101_s6] sm:$0x1] }
 0xb57   :  { %5006 = vmatprep.subr.bf16.mxu0 %v5673_v49 }
 0xb5a   :  { %5007 = vmatpush3.bf16.msra.mxu0 %v5596_v53 }
 0xb5b   :  { %5008 = vmatprep.subr.bf16.mxu0 %v5673_v49 }
 0xb5e   :  { %5009 = vmatpush3.bf16.msra.mxu0 %v5598_v63 }
 0xb5f   :  { %5010 = vmatprep.subr.bf16.mxu0 %v5673_v49 }
 0xb62   :  { %5011 = vmatpush3.bf16.msra.mxu0 %v5600_v6 }
 0xb63   :  { %5030 = vmatprep.subr.bf16.mxu0 %v5673_v49 }
 0xc02   :  { %v3513_v33 = vpop.f32.mrb[28].mxu1 }
 0xc03   :  { %v3515_v40 = vpop.f32.mrb[29].mxu1 }
 0xc04   :  { %4675 = vmatprep.mubr.msk.f32.mxu1 %vm147_vm1, %v3515_v40 }
 0xc05   :  { %3593 = vmatmul.mubr.f32.vlgmr.msra.gmra.mrb[30].mxu1 %v3513_v33 }
 0xc06   :  { %4961 = vmatpush3.bf16.msra.mxu1 %v5589_v37  ;;  %4970 = vmatprep.mubr.msk.bf16.mxu1 %vm5676_vm14, %v5673_v49 }
 0xc07   :  { %4962 = vmatprep.subr.bf16.mxu1 %v5673_v49 }
 0xc0a   :  { %4963 = vmatpush3.bf16.msra.mxu1 %v5590_v43 }
 0xc0b   :  { %4964 = vmatprep.subr.bf16.mxu1 %v5673_v49 }
 0xc0e   :  { %4965 = vmatpush3.bf16.msra.mxu1 %v5591_v50 }
 0xc0f   :  { %4966 = vmatprep.subr.bf16.mxu1 %v5673_v49 }
 0xc12   :  { %4967 = vmatpush3.bf16.msra.mxu1 %v5593_v56 }
 0xc13   :  { %4968 = vmatprep.subr.bf16.mxu1 %v5673_v49 }
 0xc16   :  { %4969 = vmatpush3.bf16.msra.mxu1 %v5595_v59 }
 0xc17   :  { %4974 = vmatprep.subr.bf16.mxu1 %v5673_v49 }
 0xcd8   :  { %v3594_v23 = vpop.f32.mrb[30].mxu1 }
 0xcd9   :  { %v3595_v26 = vadd.f32 %v4674_v20, %v3594_v23  ;;  %v3596_v29 = vpop.f32.mrb[31].mxu1  ;;  %v5624_v20 = vld [vmem:[%s7104_s9 + $0x10] sm:$0xff]   ;;  %v5625_v23 = vld [vmem:[%s7104_s9 + $0x18] sm:$0xff]  }
 0xcda   :  { %v5627_v29 = vld [vmem:[%s7104_s9 + $0x28] ss:$0 sps:$4 sm:$0x33]  }
 0xcdb   :  { %5640 = vtanh.f32 %v3595_v26  ;;  %v5626_v26 = vld [vmem:[%s7104_s9 + $0x20] sm:$0xff]   ;;  %s5677_s9 = smov [#allocation2]  }
 0xcdc   :  { %s4234_s29 = sshll.u32 %s5677_s9, 4  ;;  %s4235_s29 = int_to_ptr.vmem [resolvable:$true] %s4234_s29 }
 0xcdd   :  { %p5653_p1 = scmp.lt.s32.totalorder %s4235_s29, %s4235_s29 }
 0xce5   :  { %v5641_v32 = vpop.eup %5640 }
 0xce6   :  { %v3599_v58 = vpack.c.bf16 %v5641_v32, %v5641_v32  ;;  %v4185_v32 = vsel %vm850_vm10, %v5627_v29, 0 }
 0xce8   :  { %v3621_v5 = vshrl.u32 %v3599_v58, 16  ;;  %v3779_v62 = vrot.slane %v3599_v58, 1  ;;  %v3949_v27 = vrot.slane %v3599_v58, 2 }
 0xcea   :  { %4971 = vmatmul.mubr.msk.bf16.vlgmr.msra.gmra.mrb[32].mxu1 %vm1598_vm15, %v3621_v5  ;;  %v3864_v10 = vrot.slane %v3621_v5, 1 }
 0xceb   :  { %4975 = vmatpush3.bf16.msra.mxu1 %v5597_v60  ;;  %4984 = vmatprep.mubr.msk.bf16.mxu1 %vm5676_vm14, %v5673_v49 }
 0xcec   :  { %4976 = vmatprep.subr.bf16.mxu1 %v5673_v49  ;;  %5013 = vmatmul.mubr.msk.bf16.vlgmr.msra.gmra.mrb[44].mxu0 %vm1598_vm15, %v3864_v10 }
 0xced   :  { %5046 = vmatprep.mubr.msk.bf16.mxu0 %vm5676_vm14, %v5673_v49  ;;  %5031 = vmatpush3.bf16.msra.mxu0 %v5614_v28 }
 0xcee   :  { %5032 = vmatprep.subr.bf16.mxu0 %v5673_v49 }
 0xcef   :  { %4977 = vmatpush3.bf16.msra.mxu1 %v5599_v12 }
 0xcf0   :  { %4978 = vmatprep.subr.bf16.mxu1 %v5673_v49 }
 0xcf1   :  { %5033 = vmatpush3.bf16.msra.mxu0 %v5615_v30 }
 0xcf2   :  { %5034 = vmatprep.subr.bf16.mxu0 %v5673_v49 }
 0xcf3   :  { %4979 = vmatpush3.bf16.msra.mxu1 %v5601_v13 }
 0xcf4   :  { %4980 = vmatprep.subr.bf16.mxu1 %v5673_v49 }
 0xcf5   :  { %5035 = vmatpush3.bf16.msra.mxu0 %v5616_v31 }
 0xcf6   :  { %5036 = vmatprep.subr.bf16.mxu0 %v5673_v49 }
 0xcf7   :  { %4981 = vmatpush3.bf16.msra.mxu1 %v5602_v7 }
 0xcf8   :  { %4982 = vmatprep.subr.bf16.mxu1 %v5673_v49 }
 0xcf9   :  { %5037 = vmatpush3.bf16.msra.mxu0 %v5617_v34 }
 0xcfa   :  { %5038 = vmatprep.subr.bf16.mxu0 %v5673_v49 }
 0xcfb   :  { %4983 = vmatpush3.bf16.msra.mxu1 %v5603_v9 }
 0xcfc   :  { %4988 = vmatprep.subr.bf16.mxu1 %v5673_v49 }
 0xcfd   :  { %5039 = vmatpush3.bf16.msra.mxu0 %v5618_v35 }
 0xcfe   :  { %4985 = vmatmul.mubr.msk.bf16.vlgmr.msra.gmra.mrb[36].mxu1 %vm1598_vm15, %v3599_v58  ;;  %5040 = vmatprep.subr.bf16.mxu0 %v5673_v49  ;;  %v4042_v58 = vld [vmem:[%s7103_s8] sm:$0x1]  ;;  %s5648_s8 = scalar_lea.vmem %s4235_s29, 32 }
 0xcff   :  { %4989 = vmatpush3.bf16.msra.mxu1 %v5604_v1  ;;  %4998 = vmatprep.mubr.msk.bf16.mxu1 %vm5676_vm14, %v5673_v49  ;;  %p5649_p0 = scmp.ne.s32.totalorder %s4235_s29, %s5648_s8  ;;  %p5654_p2 = scmp.lt.s32.totalorder %s5648_s8, %s5648_s8 }
 0xd00   :  { %4990 = vmatprep.subr.bf16.mxu1 %v5673_v49 }
 0xd01   :  { %5041 = vmatpush3.bf16.msra.mxu0 %v5619_v36  ;;  %p5655_p3 = por %p5654_p2, %p5653_p1 }
 0xd02   :  { %5042 = vmatprep.subr.bf16.mxu0 %v5673_v49 }
 0xd03   :  { %4991 = vmatpush3.bf16.msra.mxu1 %v5605_v15  ;;  %p5656_p4 = pnand %p5655_p3, %p5649_p0 }
 0xd04   :  { %4992 = vmatprep.subr.bf16.mxu1 %v5673_v49 }
 0xd05   :  { %5043 = vmatpush3.bf16.msra.mxu0 %v5620_v38 }
 0xd06   :  { %5044 = vmatprep.subr.bf16.mxu0 %v5673_v49 }
 0xd07   :  { %4993 = vmatpush3.bf16.msra.mxu1 %v5606_v16 }
 0xd08   :  { %4994 = vmatprep.subr.bf16.mxu1 %v5673_v49 }
 0xd09   :  { %5045 = vmatpush3.bf16.msra.mxu0 %v4092_v44 }
 0xd0b   :  { %4995 = vmatpush3.bf16.msra.mxu1 %v5607_v18 }
 0xd0c   :  { %4996 = vmatprep.subr.bf16.mxu1 %v5673_v49 }
 0xd0f   :  { %4997 = vmatpush3.bf16.msra.mxu1 %v5608_v19 }
 0xd10   :  { %5016 = vmatprep.subr.bf16.mxu1 %v5673_v49 }
 0xd12   :  { %4999 = vmatmul.mubr.msk.bf16.vlgmr.msra.gmra.mrb[40].mxu1 %vm1598_vm15, %v3779_v62 }
 0xd13   :  { %5017 = vmatpush3.bf16.msra.mxu1 %v5609_v54  ;;  %5026 = vmatprep.mubr.msk.bf16.mxu1 %vm5676_vm14, %v5673_v49 }
 0xd14   :  { %5018 = vmatprep.subr.bf16.mxu1 %v5673_v49 }
 0xd17   :  { %5019 = vmatpush3.bf16.msra.mxu1 %v5610_v21 }
 0xd18   :  { %5020 = vmatprep.subr.bf16.mxu1 %v5673_v49 }
 0xd1b   :  { %5021 = vmatpush3.bf16.msra.mxu1 %v5611_v22 }
 0xd1c   :  { %5022 = vmatprep.subr.bf16.mxu1 %v5673_v49 }
 0xd1f   :  { %5023 = vmatpush3.bf16.msra.mxu1 %v5612_v24 }
 0xd20   :  { %5024 = vmatprep.subr.bf16.mxu1 %v5673_v49 }
 0xd23   :  { %5025 = vmatpush3.bf16.msra.mxu1 %v5613_v25 }
 0xd24   :  { %5050 = vmatprep.subr.bf16.mxu1 %v5673_v49 }
 0xd26   :  { %5027 = vmatmul.mubr.msk.bf16.vlgmr.msra.gmra.mrb[44].mxu1 %vm1598_vm15, %v3949_v27 }
 0xd27   :  { %5062 = vmatprep.mubr.msk.bf16.mxu1 %vm5676_vm14, %v5673_v49  ;;  %5051 = vmatpush3.bf16.msra.mxu1 %v5622_v45 }
 0xd28   :  { %5052 = vmatprep.subr.bf16.mxu1 %v5673_v49 }
 0xd2b   :  { %5053 = vmatpush3.bf16.msra.mxu1 %v5623_v39 }
 0xd2c   :  { %5054 = vmatprep.subr.bf16.mxu1 %v5673_v49 }
 0xd2f   :  { %5055 = vmatpush3.bf16.msra.mxu1 %v5624_v20 }
 0xd30   :  { %5056 = vmatprep.subr.bf16.mxu1 %v5673_v49 }
 0xd33   :  { %5057 = vmatpush3.bf16.msra.mxu1 %v5625_v23 }
 0xd34   :  { %5058 = vmatprep.subr.bf16.mxu1 %v5673_v49 }
 0xd37   :  { %5059 = vmatpush3.bf16.msra.mxu1 %v5626_v26 }
 0xd38   :  { %5060 = vmatprep.subr.bf16.mxu1 %v5673_v49  ;;  %v4147_v49 = vld [vmem:[%s7105_s10] sm:$0x1] }
 0xd3b   :  { %5061 = vmatpush3.bf16.msra.mxu1 %v4185_v32 }
 0xdbd   :  { %v3690_v2 = vpop.f32.mrb[32].mxu1 }
 0xdbe   :  { %v4972_v41 = vpop.f32.mrb[33].mxu1 }
 0xdbf   :  { %v3693_v47 = vpop.f32.mrb[34].mxu1  ;;  %v3932_v48 = vpop.f32.mrb[44].mxu0 }
 0xdc0   :  { %v4973_v51 = vpop.f32.mrb[35].mxu1  ;;  %v5014_v52 = vpop.f32.mrb[45].mxu0 }
 0xdc1   :  { %v3935_v55 = vpop.f32.mrb[46].mxu0 }
 0xdc2   :  { %v5015_v57 = vpop.f32.mrb[47].mxu0 }
 0xdd1   :  { %v3762_v61 = vpop.f32.mrb[36].mxu1 }
 0xdd2   :  { %v3763_v3 = vadd.f32 %v3762_v61, %v3690_v2  ;;  %v4986_v8 = vpop.f32.mrb[37].mxu1 }
 0xdd3   :  { %v3765_v11 = vpop.f32.mrb[38].mxu1 }
 0xdd4   :  { %v4987_v14 = vpop.f32.mrb[39].mxu1 }
 0xde5   :  { %v3847_v17 = vpop.f32.mrb[40].mxu1 }
 0xde6   :  { %v3853_v0 = vadd.f32 %v3847_v17, %v3763_v3  ;;  %v5000_v33 = vpop.f32.mrb[41].mxu1 }
 0xde7   :  { %v3850_v37 = vpop.f32.mrb[42].mxu1 }
 0xde8   :  { %v5001_v40 = vpop.f32.mrb[43].mxu1  ;;  %v3938_v4 = vadd.f32 %v3932_v48, %v3853_v0 }
 0xdf9   :  { %v4017_v43 = vpop.f32.mrb[44].mxu1 }
 0xdfa   :  { %v4023_v50 = vadd.f32 %v4017_v43, %v3938_v4  ;;  %v5028_v53 = vpop.f32.mrb[45].mxu1 }
 0xdfb   :  { %v4020_v56 = vpop.f32.mrb[46].mxu1 }
 0xdfc   :  { %v4025_v59 = vadd.f32 %v4024_v46, %v4023_v50  ;;  %v5029_v63 = vpop.f32.mrb[47].mxu1 }
 0xdfe   :  { %v4026_v6 = vpack.c.bf16 %v4025_v59, %v4025_v59 }
 0xe00   :  { %5047 = vmatmul.mubr.msk.bf16.vlgmr.msra.gmra.mrb[48].mxu0 %vm2037_vm6, %v4026_v6 }
 0xed3   :  { %v4128_v60 = vpop.f32.mrb[48].mxu0 }
 0xed4   :  { %v4129_v5 = vadd.f32 %v4128_v60, %v4042_v58  ;;  %v5048_v10 = vpop.f32.mrb[49].mxu0 }
 0xed5   :  { %v4131_v12 = vpop.f32.mrb[50].mxu0 }
 0xed6   :  { %5642 = vtanh.f32 %v4129_v5  ;;  %v5049_v13 = vpop.f32.mrb[51].mxu0 }
 0xee0   :  { %v5643_v7 = vpop.eup %5642 }
 0xee1   :  { %v4135_v9 = vpack.c.bf16 %v5643_v7, %v5643_v7 }
 0xee3   :  { %5063 = vmatmul.mubr.msk.bf16.vlgmr.msra.gmra.mrb[48].mxu1 %vm846_vm11, %v4135_v9 }
 0xfb6   :  { %v4221_v1 = vpop.f32.mrb[48].mxu1 }
 0xfb7   :  { %v4222_v15 = vadd.f32 %v4221_v1, %v4147_v49  ;;  %v5064_v16 = vpop.f32.mrb[49].mxu1 }
 0xfb8   :  { %v4224_v18 = vpop.f32.mrb[50].mxu1 }
 0xfb9   :  { %4227 = vst.msk [vmem:[#allocation2 + $0x1] sm:$0x1] %vm2177_vm0, %v4222_v15  ;;  %v5065_v19 = vpop.f32.mrb[51].mxu1 }
 0xfba   :  { %5659 = shalt.err (!%p5656_p4)
}
 0xfbb   :  { %s5660_s10 = scalar_lea.hbm %s7110_s15, 32 }
 0xfbc   :  { %p5661_p5 = scmp.ne.s32.totalorder %s7110_s15, %s5660_s10  ;;  %p5664_p6 = scmp.lt.u32.totalorder %s5660_s10, %s7110_s15 }
 0xfbe   :  { %p5666_p7 = pnand %p5664_p6, %p5661_p5 }
 0xfc0   :  { %5669 = shalt.err (!%p5666_p7)
}
 0xfc1   :  { %4237 = dma.vmem_to_hbm [thread:$0]  %s4235_s29, 32, %s7110_s15, [#allocation3]  }
 0xfc2   :  { %5670 = dma.done.wait [#allocation3], 32  }
 0xfc3   :  { %5671 = vsyncadd [#allocation3], 4294967264 }
 0xfc4   :  { %4241 = vsyncpa [#allocation3], 1 }

</bundles_post_ra>
